<compile_context>
chip_gen: v7x
topology: tpu7x:2x2x1
jax: 0.10.0
libtpu: 0.0.40
codegen_flags: <defaults>
</compile_context>

<pallas_src>
import numpy as np
import jax
import jax.numpy as jnp
from jax.experimental import pallas as pl
from jax.experimental.pallas import tpu as pltpu

THRESH = 0.3   # `thresh` in the PyTorch module
DECAY = 0.2    # self.decay


def _make_kernel(H, W):
    """Build the Pallas kernel body for a fixed spatial size (H, W)."""
    HW = H * W

    def kernel(x_ref, w_ref, b_ref, m_ref, out_ref):
        # x_ref  : [G, C_in, H*W]      G images for this grid step (channels in
        #                              sublanes, flattened pixels in lanes).
        # w_ref  : [9, 2*C_out, C_in]  per-tap fused weights: rows 0..C_out-1 =
        #                              conv1 (3x3) tap, rows C_out.. = con1x1
        #                              placed on the centre tap (k == 4) only.
        # b_ref  : [2*C_out, 1]        fused bias (conv1 bias rows, then con1x1).
        # m_ref  : [9, 1, G*H*W]       0/1 zero-padding edge masks per tap.
        # out_ref: [G, C_out, H*W]     spike map; values exactly {0, 1}.
        G = x_ref.shape[0]
        C_out = out_ref.shape[1]
        L = G * HW

        # Lane-dense working layout [C_in, G*H*W]: concatenate the G images
        # along the lane axis (each piece is a multiple of 128 lanes).
        xt = jnp.concatenate([x_ref[g] for g in range(G)], axis=-1)

        # 3x3 conv (+ fused 1x1 on the centre tap): 9 XLU rolls with edge masks,
        # each followed by an MXU matmul accumulating into a resident f32 acc.
        acc = None
        for k in range(9):
            dy, dx = k // 3 - 1, k % 3 - 1
            off = dy * W + dx
            if off == 0:
                tap = xt                                     # centre tap: no shift/mask
            else:
                tap = pltpu.roll(xt, (-off) % L, axis=1) * m_ref[k]
            contrib = jnp.dot(w_ref[k], tap, preferred_element_type=jnp.float32)
            acc = contrib if acc is None else acc + contrib  # [2*C_out, L] f32

        y = acc + b_ref[...]                                 # bias broadcast over lanes
        y3 = y[:C_out, :]                                    # conv1 (3x3) output
        y1 = y[C_out:, :]                                    # con1x1 output

        # mem_update with mem == spike == con1x1(x) (aliased buffers in the
        # PyTorch forward; see module-level note).
        mem = y1 * DECAY * (1.0 - y1) + y3
        spike = (mem > THRESH).astype(out_ref.dtype)         # exactly {0, 1}

        # Full-width lane-dense stores, one image at a time (256-lane slices).
        for g in range(G):
            out_ref[g] = spike[:, g * HW:(g + 1) * HW]

    return kernel


def scnn_frontend(x, w1, b1, w3, b3, *, out_dtype=jnp.bfloat16):
    """SCNN_frontend forward.

    Args (PyTorch nn.Conv2d parameter layouts):
      x : [B, S, C_in, H, W]    input sequence
      w1: [C_out, C_in, 1, 1]   con1x1.weight      b1: [C_out]   con1x1.bias
      w3: [C_out, C_in, 3, 3]   conv1.weight       b3: [C_out]   conv1.bias
    Returns [B, S, C_out, H, W].  Values are exactly {0, 1}, so the default
    bfloat16 output is lossless (pass out_dtype=jnp.float32 to match torch).
    """
    B, S, C_in, H, W = x.shape
    C_out = w3.shape[0]
    N = B * S
    HW = H * W

    # NCHW per step is already contiguous as [N, C_in, H*W]: free reshape, no
    # transpose / pad round-trips through HBM.
    x_flat = x.reshape(N, C_in, HW).astype(jnp.float32)

    # Two "parallel" grid steps so both TensorCores are used on v7x; each step
    # processes G = N // 2 images (single step if N is odd).
    num_steps = 2 if (N % 2 == 0 and N >= 2) else 1
    G = N // num_steps
    L = G * HW

    # Fused per-tap weights [9, 2*C_out, C_in]: top C_out rows carry the 3x3
    # tap weights, bottom C_out rows carry the 1x1 weights on the centre tap.
    w3_taps = jnp.transpose(w3, (2, 3, 0, 1)).reshape(9, C_out, C_in)
    w1_taps = jnp.zeros((9, C_out, C_in), w3.dtype).at[4].set(w1.reshape(C_out, C_in))
    w_taps = jnp.concatenate([w3_taps, w1_taps], axis=1).astype(jnp.float32)
    b_comb = jnp.concatenate([b3.reshape(-1), b1.reshape(-1)]).astype(jnp.float32)
    b_comb = b_comb.reshape(2 * C_out, 1)

    # 0/1 zero-padding masks per 3x3 tap, tiled across the G images of a grid
    # step.  Built with numpy from static shapes -> compile-time constant.
    hh = np.arange(H)[:, None]
    ww = np.arange(W)[None, :]
    masks = np.empty((9, HW), np.float32)
    for k in range(9):
        dy, dx = k // 3 - 1, k % 3 - 1
        valid = (hh + dy >= 0) & (hh + dy < H) & (ww + dx >= 0) & (ww + dx < W)
        masks[k] = valid.astype(np.float32).reshape(HW)
    masks = jnp.asarray(np.tile(masks[:, None, :], (1, 1, G)))   # [9, 1, G*HW]

    out = pl.pallas_call(
        _make_kernel(H, W),
        out_shape=jax.ShapeDtypeStruct((N, C_out, HW), out_dtype),
        grid=(num_steps,),
        in_specs=[
            pl.BlockSpec((G, C_in, HW), lambda i: (i, 0, 0)),
            pl.BlockSpec((9, 2 * C_out, C_in), lambda i: (0, 0, 0)),
            pl.BlockSpec((2 * C_out, 1), lambda i: (0, 0)),
            pl.BlockSpec((9, 1, L), lambda i: (0, 0, 0)),
        ],
        out_specs=pl.BlockSpec((G, C_out, HW), lambda i: (i, 0, 0)),
        compiler_params=pltpu.CompilerParams(dimension_semantics=("parallel",)),
    )(x_flat, w_taps, b_comb, masks)

    # Free reshape back to the PyTorch layout [B, S, C_out, H, W].
    return out.reshape(B, S, C_out, H, W)


def reference(x, w1, b1, w3, b3):
    """Pure-JAX reference using lax.conv, mirroring the exact PyTorch semantics."""
    B, S, C_in, H, W = x.shape
    C_out = w3.shape[0]
    xf = x.reshape(B * S, C_in, H, W).astype(jnp.float32)
    dn1 = jax.lax.conv_dimension_numbers(xf.shape, w1.shape, ("NCHW", "OIHW", "NCHW"))
    y1 = jax.lax.conv_general_dilated(xf, w1, (1, 1), "SAME",
                                      dimension_numbers=dn1) + b1.reshape(1, C_out, 1, 1)
    dn3 = jax.lax.conv_dimension_numbers(xf.shape, w3.shape, ("NCHW", "OIHW", "NCHW"))
    y3 = jax.lax.conv_general_dilated(xf, w3, (1, 1), "SAME",
                                      dimension_numbers=dn3) + b3.reshape(1, C_out, 1, 1)
    mem = y1 * DECAY * (1.0 - y1) + y3
    spike = (mem > THRESH).astype(jnp.float32)
    return spike.reshape(B, S, C_out, H, W)


if __name__ == "__main__":
    B, S, C_in, H, W = 2, 4, 4, 16, 16     # input: [batch, steps, channels, H, W]
    C_out = 8                              # SCNN_frontend(input_c=4, output_c=8)

    key = jax.random.PRNGKey(0)
    k_x, k_w1, k_b1, k_w3, k_b3 = jax.random.split(key, 5)
    x = jax.random.normal(k_x, (B, S, C_in, H, W), dtype=jnp.float32)
    # Deterministic synthetic parameters in the real nn.Conv2d layouts.
    w3 = jax.random.normal(k_w3, (C_out, C_in, 3, 3), dtype=jnp.float32) * 0.15  # conv1.weight
    b3 = jax.random.normal(k_b3, (C_out,), dtype=jnp.float32) * 0.1              # conv1.bias
    w1 = jax.random.normal(k_w1, (C_out, C_in, 1, 1), dtype=jnp.float32) * 0.3   # con1x1.weight
    b1 = jax.random.normal(k_b1, (C_out,), dtype=jnp.float32) * 0.1              # con1x1.bias

    fwd = jax.jit(scnn_frontend)
    out = jax.block_until_ready(fwd(x, w1, b1, w3, b3))

    ref = reference(x, w1, b1, w3, b3)
    assert out.shape == (B, S, C_out, H, W), out.shape
    assert out.dtype == jnp.bfloat16, out.dtype
    err = float(jnp.mean(jnp.abs(out.astype(jnp.float32) - ref)))
    assert err < 1e-3, f"mismatch vs reference: {err}"
    print("KERNEL_OK")
</pallas_src>

<mosaic_0001>
module attributes {stable_mosaic.version = 11 : i64} {
  func.func @kernel(%arg0: i32, %arg1: memref<4x4x256xf32, #tpu.memory_space<vmem>>, %arg2: memref<9x16x4xf32, #tpu.memory_space<vmem>>, %arg3: memref<16x1xf32, #tpu.memory_space<vmem>>, %arg4: memref<9x1x1024xf32, #tpu.memory_space<vmem>>, %arg5: memref<4x8x256xbf16, #tpu.memory_space<vmem>>) attributes {dimension_semantics = [#tpu.dimension_semantics<parallel>], iteration_bounds = array<i64: 2>, scalar_prefetch = 0 : i64, scratch_operands = 0 : i64, tpu.core_type = #tpu.core_type<tc>, window_params = [{transform_indices = @transform_0, window_bounds = array<i64: 4, 4, 256>}, {pipeline_mode = #tpu.pipeline_mode<synchronous>, transform_indices = @transform_1, window_bounds = array<i64: 9, 16, 4>}, {pipeline_mode = #tpu.pipeline_mode<synchronous>, transform_indices = @transform_2, window_bounds = array<i64: 16, 1>}, {pipeline_mode = #tpu.pipeline_mode<synchronous>, transform_indices = @transform_3, window_bounds = array<i64: 9, 1, 1024>}, {transform_indices = @transform_4, window_bounds = array<i64: 4, 8, 256>}]} {
    %c0 = arith.constant 0 : index
    %c0_0 = arith.constant 0 : index
    %c0_1 = arith.constant 0 : index
    %0 = vector.load %arg1[%c0, %c0_0, %c0_1] : memref<4x4x256xf32, #tpu.memory_space<vmem>>, vector<1x4x256xf32>
    %1 = vector.shape_cast %0 : vector<1x4x256xf32> to vector<4x256xf32>
    %c1 = arith.constant 1 : index
    %c0_2 = arith.constant 0 : index
    %c0_3 = arith.constant 0 : index
    %2 = vector.load %arg1[%c1, %c0_2, %c0_3] : memref<4x4x256xf32, #tpu.memory_space<vmem>>, vector<1x4x256xf32>
    %3 = vector.shape_cast %2 : vector<1x4x256xf32> to vector<4x256xf32>
    %c2 = arith.constant 2 : index
    %c0_4 = arith.constant 0 : index
    %c0_5 = arith.constant 0 : index
    %4 = vector.load %arg1[%c2, %c0_4, %c0_5] : memref<4x4x256xf32, #tpu.memory_space<vmem>>, vector<1x4x256xf32>
    %5 = vector.shape_cast %4 : vector<1x4x256xf32> to vector<4x256xf32>
    %c3 = arith.constant 3 : index
    %c0_6 = arith.constant 0 : index
    %c0_7 = arith.constant 0 : index
    %6 = vector.load %arg1[%c3, %c0_6, %c0_7] : memref<4x4x256xf32, #tpu.memory_space<vmem>>, vector<1x4x256xf32>
    %7 = vector.shape_cast %6 : vector<1x4x256xf32> to vector<4x256xf32>
    %8 = tpu.concatenate %1, %3, %5, %7 in 1 : vector<4x256xf32>, vector<4x256xf32>, vector<4x256xf32>, vector<4x256xf32> -> vector<4x1024xf32>
    %c17_i32 = arith.constant 17 : i32
    %9 = tpu.dynamic_rotate %8 by %c17_i32 dim 1 : vector<4x1024xf32>, i32 -> vector<4x1024xf32>
    %c0_8 = arith.constant 0 : index
    %c0_9 = arith.constant 0 : index
    %c0_10 = arith.constant 0 : index
    %10 = vector.load %arg4[%c0_8, %c0_9, %c0_10] : memref<9x1x1024xf32, #tpu.memory_space<vmem>>, vector<1x1x1024xf32>
    %11 = vector.shape_cast %10 : vector<1x1x1024xf32> to vector<1x1024xf32>
    %12 = vector.broadcast %11 : vector<1x1024xf32> to vector<4x1024xf32>
    %13 = arith.mulf %9, %12 : vector<4x1024xf32>
    %c0_11 = arith.constant 0 : index
    %c0_12 = arith.constant 0 : index
    %c0_13 = arith.constant 0 : index
    %14 = vector.load %arg2[%c0_11, %c0_12, %c0_13] : memref<9x16x4xf32, #tpu.memory_space<vmem>>, vector<1x16x4xf32>
    %15 = vector.shape_cast %14 : vector<1x16x4xf32> to vector<16x4xf32>
    %cst = arith.constant dense<0.000000e+00> : vector<16x1024xf32>
    %16 = tpu.matmul %15, %13, %cst {dimension_numbers = #tpu.dot_dimension_numbers<[1], [0], [0], [1], [0, 0, 1, 1], [], []>} : vector<16x4xf32>, vector<4x1024xf32>, vector<16x1024xf32> -> vector<16x1024xf32>
    %c16_i32 = arith.constant 16 : i32
    %17 = tpu.dynamic_rotate %8 by %c16_i32 dim 1 : vector<4x1024xf32>, i32 -> vector<4x1024xf32>
    %c1_14 = arith.constant 1 : index
    %c0_15 = arith.constant 0 : index
    %c0_16 = arith.constant 0 : index
    %18 = vector.load %arg4[%c1_14, %c0_15, %c0_16] : memref<9x1x1024xf32, #tpu.memory_space<vmem>>, vector<1x1x1024xf32>
    %19 = vector.shape_cast %18 : vector<1x1x1024xf32> to vector<1x1024xf32>
    %20 = vector.broadcast %19 : vector<1x1024xf32> to vector<4x1024xf32>
    %21 = arith.mulf %17, %20 : vector<4x1024xf32>
    %c1_17 = arith.constant 1 : index
    %c0_18 = arith.constant 0 : index
    %c0_19 = arith.constant 0 : index
    %22 = vector.load %arg2[%c1_17, %c0_18, %c0_19] : memref<9x16x4xf32, #tpu.memory_space<vmem>>, vector<1x16x4xf32>
    %23 = vector.shape_cast %22 : vector<1x16x4xf32> to vector<16x4xf32>
    %cst_20 = arith.constant dense<0.000000e+00> : vector<16x1024xf32>
    %24 = tpu.matmul %23, %21, %cst_20 {dimension_numbers = #tpu.dot_dimension_numbers<[1], [0], [0], [1], [0, 0, 1, 1], [], []>} : vector<16x4xf32>, vector<4x1024xf32>, vector<16x1024xf32> -> vector<16x1024xf32>
    %25 = arith.addf %16, %24 : vector<16x1024xf32>
    %c15_i32 = arith.constant 15 : i32
    %26 = tpu.dynamic_rotate %8 by %c15_i32 dim 1 : vector<4x1024xf32>, i32 -> vector<4x1024xf32>
    %c2_21 = arith.constant 2 : index
    %c0_22 = arith.constant 0 : index
    %c0_23 = arith.constant 0 : index
    %27 = vector.load %arg4[%c2_21, %c0_22, %c0_23] : memref<9x1x1024xf32, #tpu.memory_space<vmem>>, vector<1x1x1024xf32>
    %28 = vector.shape_cast %27 : vector<1x1x1024xf32> to vector<1x1024xf32>
    %29 = vector.broadcast %28 : vector<1x1024xf32> to vector<4x1024xf32>
    %30 = arith.mulf %26, %29 : vector<4x1024xf32>
    %c2_24 = arith.constant 2 : index
    %c0_25 = arith.constant 0 : index
    %c0_26 = arith.constant 0 : index
    %31 = vector.load %arg2[%c2_24, %c0_25, %c0_26] : memref<9x16x4xf32, #tpu.memory_space<vmem>>, vector<1x16x4xf32>
    %32 = vector.shape_cast %31 : vector<1x16x4xf32> to vector<16x4xf32>
    %cst_27 = arith.constant dense<0.000000e+00> : vector<16x1024xf32>
    %33 = tpu.matmul %32, %30, %cst_27 {dimension_numbers = #tpu.dot_dimension_numbers<[1], [0], [0], [1], [0, 0, 1, 1], [], []>} : vector<16x4xf32>, vector<4x1024xf32>, vector<16x1024xf32> -> vector<16x1024xf32>
    %34 = arith.addf %25, %33 : vector<16x1024xf32>
    %c1_i32 = arith.constant 1 : i32
    %35 = tpu.dynamic_rotate %8 by %c1_i32 dim 1 : vector<4x1024xf32>, i32 -> vector<4x1024xf32>
    %c3_28 = arith.constant 3 : index
    %c0_29 = arith.constant 0 : index
    %c0_30 = arith.constant 0 : index
    %36 = vector.load %arg4[%c3_28, %c0_29, %c0_30] : memref<9x1x1024xf32, #tpu.memory_space<vmem>>, vector<1x1x1024xf32>
    %37 = vector.shape_cast %36 : vector<1x1x1024xf32> to vector<1x1024xf32>
    %38 = vector.broadcast %37 : vector<1x1024xf32> to vector<4x1024xf32>
    %39 = arith.mulf %35, %38 : vector<4x1024xf32>
    %c3_31 = arith.constant 3 : index
    %c0_32 = arith.constant 0 : index
    %c0_33 = arith.constant 0 : index
    %40 = vector.load %arg2[%c3_31, %c0_32, %c0_33] : memref<9x16x4xf32, #tpu.memory_space<vmem>>, vector<1x16x4xf32>
    %41 = vector.shape_cast %40 : vector<1x16x4xf32> to vector<16x4xf32>
    %cst_34 = arith.constant dense<0.000000e+00> : vector<16x1024xf32>
    %42 = tpu.matmul %41, %39, %cst_34 {dimension_numbers = #tpu.dot_dimension_numbers<[1], [0], [0], [1], [0, 0, 1, 1], [], []>} : vector<16x4xf32>, vector<4x1024xf32>, vector<16x1024xf32> -> vector<16x1024xf32>
    %43 = arith.addf %34, %42 : vector<16x1024xf32>
    %c4 = arith.constant 4 : index
    %c0_35 = arith.constant 0 : index
    %c0_36 = arith.constant 0 : index
    %44 = vector.load %arg2[%c4, %c0_35, %c0_36] : memref<9x16x4xf32, #tpu.memory_space<vmem>>, vector<1x16x4xf32>
    %45 = vector.shape_cast %44 : vector<1x16x4xf32> to vector<16x4xf32>
    %cst_37 = arith.constant dense<0.000000e+00> : vector<16x1024xf32>
    %46 = tpu.matmul %45, %8, %cst_37 {dimension_numbers = #tpu.dot_dimension_numbers<[1], [0], [0], [1], [0, 0, 1, 1], [], []>} : vector<16x4xf32>, vector<4x1024xf32>, vector<16x1024xf32> -> vector<16x1024xf32>
    %47 = arith.addf %43, %46 : vector<16x1024xf32>
    %c1023_i32 = arith.constant 1023 : i32
    %48 = tpu.dynamic_rotate %8 by %c1023_i32 dim 1 : vector<4x1024xf32>, i32 -> vector<4x1024xf32>
    %c5 = arith.constant 5 : index
    %c0_38 = arith.constant 0 : index
    %c0_39 = arith.constant 0 : index
    %49 = vector.load %arg4[%c5, %c0_38, %c0_39] : memref<9x1x1024xf32, #tpu.memory_space<vmem>>, vector<1x1x1024xf32>
    %50 = vector.shape_cast %49 : vector<1x1x1024xf32> to vector<1x1024xf32>
    %51 = vector.broadcast %50 : vector<1x1024xf32> to vector<4x1024xf32>
    %52 = arith.mulf %48, %51 : vector<4x1024xf32>
    %c5_40 = arith.constant 5 : index
    %c0_41 = arith.constant 0 : index
    %c0_42 = arith.constant 0 : index
    %53 = vector.load %arg2[%c5_40, %c0_41, %c0_42] : memref<9x16x4xf32, #tpu.memory_space<vmem>>, vector<1x16x4xf32>
    %54 = vector.shape_cast %53 : vector<1x16x4xf32> to vector<16x4xf32>
    %cst_43 = arith.constant dense<0.000000e+00> : vector<16x1024xf32>
    %55 = tpu.matmul %54, %52, %cst_43 {dimension_numbers = #tpu.dot_dimension_numbers<[1], [0], [0], [1], [0, 0, 1, 1], [], []>} : vector<16x4xf32>, vector<4x1024xf32>, vector<16x1024xf32> -> vector<16x1024xf32>
    %56 = arith.addf %47, %55 : vector<16x1024xf32>
    %c1009_i32 = arith.constant 1009 : i32
    %57 = tpu.dynamic_rotate %8 by %c1009_i32 dim 1 : vector<4x1024xf32>, i32 -> vector<4x1024xf32>
    %c6 = arith.constant 6 : index
    %c0_44 = arith.constant 0 : index
    %c0_45 = arith.constant 0 : index
    %58 = vector.load %arg4[%c6, %c0_44, %c0_45] : memref<9x1x1024xf32, #tpu.memory_space<vmem>>, vector<1x1x1024xf32>
    %59 = vector.shape_cast %58 : vector<1x1x1024xf32> to vector<1x1024xf32>
    %60 = vector.broadcast %59 : vector<1x1024xf32> to vector<4x1024xf32>
    %61 = arith.mulf %57, %60 : vector<4x1024xf32>
    %c6_46 = arith.constant 6 : index
    %c0_47 = arith.constant 0 : index
    %c0_48 = arith.constant 0 : index
    %62 = vector.load %arg2[%c6_46, %c0_47, %c0_48] : memref<9x16x4xf32, #tpu.memory_space<vmem>>, vector<1x16x4xf32>
    %63 = vector.shape_cast %62 : vector<1x16x4xf32> to vector<16x4xf32>
    %cst_49 = arith.constant dense<0.000000e+00> : vector<16x1024xf32>
    %64 = tpu.matmul %63, %61, %cst_49 {dimension_numbers = #tpu.dot_dimension_numbers<[1], [0], [0], [1], [0, 0, 1, 1], [], []>} : vector<16x4xf32>, vector<4x1024xf32>, vector<16x1024xf32> -> vector<16x1024xf32>
    %65 = arith.addf %56, %64 : vector<16x1024xf32>
    %c1008_i32 = arith.constant 1008 : i32
    %66 = tpu.dynamic_rotate %8 by %c1008_i32 dim 1 : vector<4x1024xf32>, i32 -> vector<4x1024xf32>
    %c7 = arith.constant 7 : index
    %c0_50 = arith.constant 0 : index
    %c0_51 = arith.constant 0 : index
    %67 = vector.load %arg4[%c7, %c0_50, %c0_51] : memref<9x1x1024xf32, #tpu.memory_space<vmem>>, vector<1x1x1024xf32>
    %68 = vector.shape_cast %67 : vector<1x1x1024xf32> to vector<1x1024xf32>
    %69 = vector.broadcast %68 : vector<1x1024xf32> to vector<4x1024xf32>
    %70 = arith.mulf %66, %69 : vector<4x1024xf32>
    %c7_52 = arith.constant 7 : index
    %c0_53 = arith.constant 0 : index
    %c0_54 = arith.constant 0 : index
    %71 = vector.load %arg2[%c7_52, %c0_53, %c0_54] : memref<9x16x4xf32, #tpu.memory_space<vmem>>, vector<1x16x4xf32>
    %72 = vector.shape_cast %71 : vector<1x16x4xf32> to vector<16x4xf32>
    %cst_55 = arith.constant dense<0.000000e+00> : vector<16x1024xf32>
    %73 = tpu.matmul %72, %70, %cst_55 {dimension_numbers = #tpu.dot_dimension_numbers<[1], [0], [0], [1], [0, 0, 1, 1], [], []>} : vector<16x4xf32>, vector<4x1024xf32>, vector<16x1024xf32> -> vector<16x1024xf32>
    %74 = arith.addf %65, %73 : vector<16x1024xf32>
    %c1007_i32 = arith.constant 1007 : i32
    %75 = tpu.dynamic_rotate %8 by %c1007_i32 dim 1 : vector<4x1024xf32>, i32 -> vector<4x1024xf32>
    %c8 = arith.constant 8 : index
    %c0_56 = arith.constant 0 : index
    %c0_57 = arith.constant 0 : index
    %76 = vector.load %arg4[%c8, %c0_56, %c0_57] : memref<9x1x1024xf32, #tpu.memory_space<vmem>>, vector<1x1x1024xf32>
    %77 = vector.shape_cast %76 : vector<1x1x1024xf32> to vector<1x1024xf32>
    %78 = vector.broadcast %77 : vector<1x1024xf32> to vector<4x1024xf32>
    %79 = arith.mulf %75, %78 : vector<4x1024xf32>
    %c8_58 = arith.constant 8 : index
    %c0_59 = arith.constant 0 : index
    %c0_60 = arith.constant 0 : index
    %80 = vector.load %arg2[%c8_58, %c0_59, %c0_60] : memref<9x16x4xf32, #tpu.memory_space<vmem>>, vector<1x16x4xf32>
    %81 = vector.shape_cast %80 : vector<1x16x4xf32> to vector<16x4xf32>
    %cst_61 = arith.constant dense<0.000000e+00> : vector<16x1024xf32>
    %82 = tpu.matmul %81, %79, %cst_61 {dimension_numbers = #tpu.dot_dimension_numbers<[1], [0], [0], [1], [0, 0, 1, 1], [], []>} : vector<16x4xf32>, vector<4x1024xf32>, vector<16x1024xf32> -> vector<16x1024xf32>
    %83 = arith.addf %74, %82 : vector<16x1024xf32>
    %c0_62 = arith.constant 0 : index
    %c0_63 = arith.constant 0 : index
    %84 = vector.load %arg3[%c0_62, %c0_63] : memref<16x1xf32, #tpu.memory_space<vmem>>, vector<16x1xf32>
    %85 = vector.broadcast %84 : vector<16x1xf32> to vector<16x1024xf32>
    %86 = arith.addf %83, %85 : vector<16x1024xf32>
    %87 = vector.extract_strided_slice %86 {offsets = [0, 0], sizes = [8, 1024], strides = [1, 1]} : vector<16x1024xf32> to vector<8x1024xf32>
    %88 = vector.extract_strided_slice %86 {offsets = [8, 0], sizes = [8, 1024], strides = [1, 1]} : vector<16x1024xf32> to vector<8x1024xf32>
    %cst_64 = arith.constant 2.000000e-01 : f32
    %89 = vector.broadcast %cst_64 : f32 to vector<8x1024xf32>
    %90 = arith.mulf %88, %89 : vector<8x1024xf32>
    %cst_65 = arith.constant 1.000000e+00 : f32
    %91 = vector.broadcast %cst_65 : f32 to vector<8x1024xf32>
    %92 = arith.subf %91, %88 : vector<8x1024xf32>
    %93 = arith.mulf %90, %92 : vector<8x1024xf32>
    %94 = arith.addf %93, %87 : vector<8x1024xf32>
    %cst_66 = arith.constant 3.000000e-01 : f32
    %95 = vector.broadcast %cst_66 : f32 to vector<8x1024xf32>
    %96 = arith.cmpf ogt, %94, %95 : vector<8x1024xf32>
    %97 = arith.extui %96 : vector<8x1024xi1> to vector<8x1024xi32>
    %98 = arith.sitofp %97 : vector<8x1024xi32> to vector<8x1024xf32>
    %99 = arith.truncf %98 : vector<8x1024xf32> to vector<8x1024xbf16>
    %100 = vector.extract_strided_slice %99 {offsets = [0, 0], sizes = [8, 256], strides = [1, 1]} : vector<8x1024xbf16> to vector<8x256xbf16>
    %c0_67 = arith.constant 0 : index
    %c0_68 = arith.constant 0 : index
    %c0_69 = arith.constant 0 : index
    %101 = vector.load %arg5[%c0_67, %c0_68, %c0_69] : memref<4x8x256xbf16, #tpu.memory_space<vmem>>, vector<1x8x256xbf16>
    %102 = vector.shape_cast %101 : vector<1x8x256xbf16> to vector<8x256xbf16>
    %103 = vector.shape_cast %100 : vector<8x256xbf16> to vector<1x8x256xbf16>
    tpu.vector_store %arg5[%c0_67, %c0_68, %c0_69], %103 {strides = array<i32>} : memref<4x8x256xbf16, #tpu.memory_space<vmem>>, vector<1x8x256xbf16>,
    %104 = vector.extract_strided_slice %99 {offsets = [0, 256], sizes = [8, 256], strides = [1, 1]} : vector<8x1024xbf16> to vector<8x256xbf16>
    %c1_70 = arith.constant 1 : index
    %c0_71 = arith.constant 0 : index
    %c0_72 = arith.constant 0 : index
    %105 = vector.load %arg5[%c1_70, %c0_71, %c0_72] : memref<4x8x256xbf16, #tpu.memory_space<vmem>>, vector<1x8x256xbf16>
    %106 = vector.shape_cast %105 : vector<1x8x256xbf16> to vector<8x256xbf16>
    %107 = vector.shape_cast %104 : vector<8x256xbf16> to vector<1x8x256xbf16>
    tpu.vector_store %arg5[%c1_70, %c0_71, %c0_72], %107 {strides = array<i32>} : memref<4x8x256xbf16, #tpu.memory_space<vmem>>, vector<1x8x256xbf16>,
    %108 = vector.extract_strided_slice %99 {offsets = [0, 512], sizes = [8, 256], strides = [1, 1]} : vector<8x1024xbf16> to vector<8x256xbf16>
    %c2_73 = arith.constant 2 : index
    %c0_74 = arith.constant 0 : index
    %c0_75 = arith.constant 0 : index
    %109 = vector.load %arg5[%c2_73, %c0_74, %c0_75] : memref<4x8x256xbf16, #tpu.memory_space<vmem>>, vector<1x8x256xbf16>
    %110 = vector.shape_cast %109 : vector<1x8x256xbf16> to vector<8x256xbf16>
    %111 = vector.shape_cast %108 : vector<8x256xbf16> to vector<1x8x256xbf16>
    tpu.vector_store %arg5[%c2_73, %c0_74, %c0_75], %111 {strides = array<i32>} : memref<4x8x256xbf16, #tpu.memory_space<vmem>>, vector<1x8x256xbf16>,
    %112 = vector.extract_strided_slice %99 {offsets = [0, 768], sizes = [8, 256], strides = [1, 1]} : vector<8x1024xbf16> to vector<8x256xbf16>
    %c3_76 = arith.constant 3 : index
    %c0_77 = arith.constant 0 : index
    %c0_78 = arith.constant 0 : index
    %113 = vector.load %arg5[%c3_76, %c0_77, %c0_78] : memref<4x8x256xbf16, #tpu.memory_space<vmem>>, vector<1x8x256xbf16>
    %114 = vector.shape_cast %113 : vector<1x8x256xbf16> to vector<8x256xbf16>
    %115 = vector.shape_cast %112 : vector<8x256xbf16> to vector<1x8x256xbf16>
    tpu.vector_store %arg5[%c3_76, %c0_77, %c0_78], %115 {strides = array<i32>} : memref<4x8x256xbf16, #tpu.memory_space<vmem>>, vector<1x8x256xbf16>,
    return
  }
  func.func @transform_0(%arg0: i32) -> (i32, i32, i32) {
    %c0_i32 = arith.constant 0 : i32
    %c0_i32_0 = arith.constant 0 : i32
    %c0_i32_1 = arith.constant 0 : i32
    return %arg0, %c0_i32, %c0_i32_0 : i32, i32, i32
  }
  func.func @transform_1(%arg0: i32) -> (i32, i32, i32) {
    %c0_i32 = arith.constant 0 : i32
    %c0_i32_0 = arith.constant 0 : i32
    %c0_i32_1 = arith.constant 0 : i32
    %c0_i32_2 = arith.constant 0 : i32
    return %c0_i32, %c0_i32_0, %c0_i32_1 : i32, i32, i32
  }
  func.func @transform_2(%arg0: i32) -> (i32, i32) {
    %c0_i32 = arith.constant 0 : i32
    %c0_i32_0 = arith.constant 0 : i32
    %c0_i32_1 = arith.constant 0 : i32
    return %c0_i32, %c0_i32_0 : i32, i32
  }
  func.func @transform_3(%arg0: i32) -> (i32, i32, i32) {
    %c0_i32 = arith.constant 0 : i32
    %c0_i32_0 = arith.constant 0 : i32
    %c0_i32_1 = arith.constant 0 : i32
    %c0_i32_2 = arith.constant 0 : i32
    return %c0_i32, %c0_i32_0, %c0_i32_1 : i32, i32, i32
  }
  func.func @transform_4(%arg0: i32) -> (i32, i32, i32) {
    %c0_i32 = arith.constant 0 : i32
    %c0_i32_0 = arith.constant 0 : i32
    %c0_i32_1 = arith.constant 0 : i32
    return %arg0, %c0_i32, %c0_i32_0 : i32, i32, i32
  }
}

</mosaic_0001>

<bundles_post_ra>
// kernel: scnn_frontend.1
= control target key start
LH: loop header
LB: loop body
LE: loop exit
PB: predicated region body
PF: predicated region fallthrough
CT: control target
= control target key end

     0   :  { %s4588_s15 = smov 0   ;;  %s5328_s0 = inlined_call_operand.vmem [shape: f32[8,4,256], index: 0, kind: input, shape index: {}]   ;;  %s5329_s1 = inlined_call_operand.vmem [shape: f32[9,16,4], index: 1, kind: input, shape index: {}]   ;;  %s5330_s2 = inlined_call_operand.vmem [shape: f32[16,1], index: 2, kind: input, shape index: {}]   ;;  %s5331_s3 = inlined_call_operand.vmem [shape: f32[9,1,1024], index: 3, kind: input, shape index: {}]   ;;  %s5332_s4 = inlined_call_operand.vmem [shape: bf16[8,8,256], index: 4, kind: output, shape index: {}]  }
   0x1 LB: > { %s4189_s16 = sadd.s32 4294967295, %s4551_s15   ;;  %p4193_p0 = scmp.ge.s32.totalorder %s4551_s15, 1  ;;  %s4551_s15 = sphi %s4588_s15, %s14_s15  }
   0x2   : > { %p164_p1 = scmp.lt.s32.totalorder %s4551_s15, 3 }
   0x4   : > { %p165_p2 = pnand %p4193_p0, %p164_p1 }
   0x5   : > { %s4194_s17 = sshll.u32 (!%p165_p2), %s4189_s16, 2  ;;  %v4553_v0 = vmov (!%p165_p2), 0.0   ;;  %s4554_s22 = smov (!%p165_p2), 16   ;;  %v241_v9 = vlaneseq (!%p165_p2)  ;;  %v4203_v15 = vld [vmem:[%s5331_s3 + $0x8] sm:$0xff] (!%p165_p2)  ;;  %vm390_vm1 = vcmask (!%p165_p2), 1043456   ;;  %v4204_v34 = vld [vmem:[%s5329_s1 + $0x10] sm:$0xff] (!%p165_p2) }
   0x6   : > { %168 = sbr.rel (%p165_p2) target bundleno = 511 (0x1ff), region = 36  ;;  %p193_p3 = scmp.lt.s32.totalorder (!%p165_p2), %s4194_s17, 7  ;;  %556 = vmatprep.mubr.f32.mxu1 (!%p165_p2), %v4553_v0  ;;  %479 = vmatprep.mubr.f32.mxu0 (!%p165_p2), %v4553_v0  ;;  %vm383_vm2 = vcmask (!%p165_p2), 31744   ;;  %v4742_v40 = vld [vmem:[%s5331_s3] sm:$0xff] (!%p165_p2)  ;;  %v4205_v44 = vld [vmem:[%s5329_s1 + $0x18] sm:$0xff] (!%p165_p2) }
   0x7   : > { %s4555_s23 = smov (!%p165_p2), 17   ;;  %s4556_s24 = smov (!%p165_p2), 15   ;;  %v255_v10 = vshrl.u32 (!%p165_p2), %v241_v9, 7  ;;  %v4686_v11 = vand.u32 (!%p165_p2), 127, %v241_v9 }
   0x8   : > { %s4557_s25 = smov (!%p165_p2), 1   ;;  %s4558_s26 = smov (!%p165_p2), 127  }
   0x9   : > { %s4559_s27 = smov (!%p165_p2), 113   ;;  %s4560_s28 = smov (!%p165_p2), 112   ;;  %v4688_v12 = vsub.s32 (!%p165_p2), 2, %v255_v10  ;;  %v4692_v13 = vsub.s32 (!%p165_p2), 3, %v255_v10  ;;  %v4696_v14 = vsub.s32 (!%p165_p2), 1, %v255_v10  ;;  %v4701_v18 = vsub.s32 (!%p165_p2), 0, %v255_v10 }
   0xa   : > { %s4561_s29 = smov (!%p165_p2), 111   ;;  %vm320_vm0 = vcmp.lt.s32.totalorder (!%p165_p2), %v4686_v11, 16  ;;  %v4711_v24 = vsub.s32 (!%p165_p2), 7, %v255_v10  ;;  %v4713_v25 = vsub.s32 (!%p165_p2), 5, %v255_v10  ;;  %v4722_v33 = vsub.s32 (!%p165_p2), 6, %v255_v10 }
   0xb   : > { %v343_v19 = vrot.slane (!%p165_p2), %v4203_v15, %v4688_v12  ;;  %v347_v20 = vrot.slane (!%p165_p2), %v4203_v15, %v4692_v13  ;;  %v339_v21 = vrot.slane (!%p165_p2), %v4203_v15, %v4696_v14  ;;  %v335_v29 = vrot.slane (!%p165_p2), %v4203_v15, %v4701_v18 }
   0xc   : > { %v4732_v35 = vsub.s32 (!%p165_p2), 4, %v255_v10  ;;  %v363_v39 = vrot.slane (!%p165_p2), %v4203_v15, %v4711_v24  ;;  %v355_v42 = vrot.slane (!%p165_p2), %v4203_v15, %v4713_v25  ;;  %v359_v43 = vrot.slane (!%p165_p2), %v4203_v15, %v4722_v33 }
   0xd   : > { %s5334_s17 = smov (!%p193_p3, %s4194_s17), 7  ;;  %v261_v48 = vrot.slane %v4742_v40, %v4696_v14  ;;  %vm243_vm3 = vcmp.lt.s32.totalorder %v4686_v11, 17  ;;  %v265_v61 = vrot.slane %v4742_v40, %v4688_v12  ;;  %v269_v62 = vrot.slane %v4742_v40, %v4692_v13 }
   0xe   : > { %s4387_s18 = sshll.u32 %s5334_s17, 3  ;;  %v351_v45 = vrot.slane %v4203_v15, %v4732_v35  ;;  %vm1077_vm4 = vcmp.lt.s32.totalorder %v4686_v11, 15  ;;  %vm1510_vm5 = vcmp.lt.s32.totalorder %v4686_v11, 1  ;;  %vm2292_vm6 = vcmp.lt.s32.totalorder %v4686_v11, 127 }
   0xf   : > { %s197_s21 = scalar_lea.vmem %s5328_s0, %s4387_s18  ;;  %vm2725_vm7 = vcmp.lt.s32.totalorder %v4686_v11, 113  ;;  %vm3158_vm8 = vcmp.lt.s32.totalorder %v4686_v11, 112  ;;  %vm3591_vm9 = vcmp.lt.s32.totalorder %v4686_v11, 111  ;;  %v4353_v11 = vld [vmem:[%s5329_s1 + $0x88] sm:$0xff]  ;;  %s5311_s19 = scalar_lea.vmem %s5332_s4, %s4387_s18 }
  0x10   : > { %v4606_v1 = vld [vmem:[%s197_s21 + $0x8] sm:$0xff]  ;;  %v4608_v2 = vld [vmem:[%s197_s21] sm:$0xff]  ;;  %v4620_v5 = vld [vmem:[%s197_s21 + $0x18] sm:$0xff] }
  0x11   : > { %308 = vrot.lane.b32.xlu1 %v4606_v1, %s4554_s22  ;;  %304 = vrot.lane.b32.xlu0 %v4608_v2, %s4554_s22  ;;  %v4614_v3 = vcombine.high %v4606_v1, %v4606_v1  ;;  %v4618_v4 = vcombine.high %v4608_v2, %v4608_v2  ;;  %v4626_v6 = vcombine.high %v4620_v5, %v4620_v5  ;;  %v4628_v7 = vld [vmem:[%s197_s21 + $0x10] sm:$0xff] }
  0x12   : > { %v4634_v8 = vcombine.high %v4628_v7, %v4628_v7 }
  0x15   : > { %310 = vrot.lane.b32.xlu1 %v4614_v3, %s4554_s22  ;;  %306 = vrot.lane.b32.xlu0 %v4618_v4, %s4554_s22 }
  0x19   : > { %312 = vrot.lane.b32.xlu1 %v4628_v7, %s4554_s22  ;;  %318 = vrot.lane.b32.xlu0 %v4626_v6, %s4554_s22 }
  0x1d   : > { %316 = vrot.lane.b32.xlu1 %v4620_v5, %s4554_s22  ;;  %314 = vrot.lane.b32.xlu0 %v4634_v8, %s4554_s22 }
  0x21   : > { %227 = vrot.lane.b32.xlu1 %v4618_v4, %s4555_s23  ;;  %225 = vrot.lane.b32.xlu0 %v4608_v2, %s4555_s23 }
  0x25   : > { %231 = vrot.lane.b32.xlu1 %v4614_v3, %s4555_s23  ;;  %229 = vrot.lane.b32.xlu0 %v4606_v1, %s4555_s23 }
  0x29   : > { %233 = vrot.lane.b32.xlu1 %v4628_v7, %s4555_s23  ;;  %239 = vrot.lane.b32.xlu0 %v4626_v6, %s4555_s23 }
  0x2d   : > { %237 = vrot.lane.b32.xlu1 %v4620_v5, %s4555_s23  ;;  %235 = vrot.lane.b32.xlu0 %v4634_v8, %s4555_s23 }
  0x31   : > { %1063 = vrot.lane.b32.xlu1 %v4618_v4, %s4556_s24  ;;  %1061 = vrot.lane.b32.xlu0 %v4608_v2, %s4556_s24 }
  0x35   : > { %1067 = vrot.lane.b32.xlu1 %v4614_v3, %s4556_s24  ;;  %1065 = vrot.lane.b32.xlu0 %v4606_v1, %s4556_s24 }
  0x39   : > { %1069 = vrot.lane.b32.xlu1 %v4628_v7, %s4556_s24  ;;  %1075 = vrot.lane.b32.xlu0 %v4626_v6, %s4556_s24 }
  0x3d   : > { %1073 = vrot.lane.b32.xlu1 %v4620_v5, %s4556_s24  ;;  %1071 = vrot.lane.b32.xlu0 %v4634_v8, %s4556_s24 }
  0x41   : > { %1496 = vrot.lane.b32.xlu1 %v4618_v4, %s4557_s25  ;;  %1494 = vrot.lane.b32.xlu0 %v4608_v2, %s4557_s25 }
  0x45   : > { %1500 = vrot.lane.b32.xlu1 %v4614_v3, %s4557_s25  ;;  %1498 = vrot.lane.b32.xlu0 %v4606_v1, %s4557_s25 }
  0x49   : > { %1502 = vrot.lane.b32.xlu1 %v4628_v7, %s4557_s25  ;;  %1508 = vrot.lane.b32.xlu0 %v4626_v6, %s4557_s25 }
  0x4d   : > { %1506 = vrot.lane.b32.xlu1 %v4620_v5, %s4557_s25  ;;  %1504 = vrot.lane.b32.xlu0 %v4634_v8, %s4557_s25 }
  0x51   : > { %2280 = vrot.lane.b32.xlu1 %v4606_v1, %s4558_s26  ;;  %2278 = vrot.lane.b32.xlu0 %v4618_v4, %s4558_s26 }
  0x55   : > { %2282 = vrot.lane.b32.xlu1 %v4614_v3, %s4558_s26  ;;  %2276 = vrot.lane.b32.xlu0 %v4608_v2, %s4558_s26 }
  0x59   : > { %2286 = vrot.lane.b32.xlu1 %v4634_v8, %s4558_s26  ;;  %2284 = vrot.lane.b32.xlu0 %v4628_v7, %s4558_s26 }
  0x5d   : > { %2290 = vrot.lane.b32.xlu1 %v4626_v6, %s4558_s26  ;;  %2288 = vrot.lane.b32.xlu0 %v4620_v5, %s4558_s26 }
  0x61   : > { %2713 = vrot.lane.b32.xlu1 %v4606_v1, %s4559_s27  ;;  %2711 = vrot.lane.b32.xlu0 %v4618_v4, %s4559_s27 }
  0x65   : > { %2715 = vrot.lane.b32.xlu1 %v4614_v3, %s4559_s27  ;;  %2709 = vrot.lane.b32.xlu0 %v4608_v2, %s4559_s27 }
  0x69   : > { %2719 = vrot.lane.b32.xlu1 %v4634_v8, %s4559_s27  ;;  %2717 = vrot.lane.b32.xlu0 %v4628_v7, %s4559_s27 }
  0x6d   : > { %2723 = vrot.lane.b32.xlu1 %v4626_v6, %s4559_s27  ;;  %2721 = vrot.lane.b32.xlu0 %v4620_v5, %s4559_s27 }
  0x71   : > { %3146 = vrot.lane.b32.xlu1 %v4606_v1, %s4560_s28  ;;  %3144 = vrot.lane.b32.xlu0 %v4618_v4, %s4560_s28 }
  0x75   : > { %3148 = vrot.lane.b32.xlu1 %v4614_v3, %s4560_s28  ;;  %3142 = vrot.lane.b32.xlu0 %v4608_v2, %s4560_s28 }
  0x79   : > { %3152 = vrot.lane.b32.xlu1 %v4634_v8, %s4560_s28  ;;  %3150 = vrot.lane.b32.xlu0 %v4628_v7, %s4560_s28 }
  0x7d   : > { %3156 = vrot.lane.b32.xlu1 %v4626_v6, %s4560_s28  ;;  %3154 = vrot.lane.b32.xlu0 %v4620_v5, %s4560_s28 }
  0x81   : > { %3579 = vrot.lane.b32.xlu1 %v4606_v1, %s4561_s29  ;;  %3577 = vrot.lane.b32.xlu0 %v4618_v4, %s4561_s29 }
  0x83   : > { %v309_v16 = vpop.permute.xlu1 %308  ;;  %v305_v17 = vpop.permute.xlu0 %304 }
  0x85   : > { %3581 = vrot.lane.b32.xlu1 %v4614_v3, %s4561_s29  ;;  %3575 = vrot.lane.b32.xlu0 %v4608_v2, %s4561_s29 }
  0x87   : > { %v311_v22 = vpop.permute.xlu1 %310  ;;  %v307_v23 = vpop.permute.xlu0 %306 }
  0x88   : > { %v325_v26 = vsel %vm320_vm0, %v309_v16, %v311_v22  ;;  %v326_v27 = vsel %vm320_vm0, %v307_v23, %v309_v16  ;;  %v327_v28 = vsel %vm320_vm0, %v305_v17, %v307_v23 }
  0x89   : > { %v374_v30 = vmul.f32 %v343_v19, %v326_v27  ;;  %v375_v31 = vmul.f32 %v347_v20, %v325_v26  ;;  %v373_v32 = vmul.f32 %v339_v21, %v327_v28  ;;  %3585 = vrot.lane.b32.xlu1 %v4634_v8, %s4561_s29  ;;  %3583 = vrot.lane.b32.xlu0 %v4628_v7, %s4561_s29  ;;  %v302_v20 = vld [vmem:[%s5329_s1] sm:$0xff]  ;;  %v4810_v27 = vld [vmem:[%s5331_s3 + $0x10] sm:$0xff] }
  0x8a   : > { %v257_v19 = vrot.slane %v4742_v40, %v4701_v18  ;;  %v285_v26 = vrot.slane %v4742_v40, %v4711_v24  ;;  %v4008_v28 = vld [vmem:[%s5330_s2] sm:$0xff] }
  0x8b   : > { %4210 = vmatprep.subr.msk.mxu1 %vm390_vm1, %v375_v31  ;;  %v313_v36 = vpop.permute.xlu1 %312  ;;  %4206 = vmatprep.subr.msk.mxu0 %vm390_vm1, %v373_v32  ;;  %v319_v37 = vpop.permute.xlu0 %318  ;;  %v281_v31 = vrot.slane %v4742_v40, %v4722_v33  ;;  %v303_v32 = vld [vmem:[%s5329_s1 + $0x8] sm:$0xff] }
  0x8c   : > { %v328_v38 = vsel %vm320_vm0, %v319_v37, %v305_v17  ;;  %4211 = vmatpush1.msk.msra.mxu1 %vm390_vm1, %v374_v30  ;;  %v324_v49 = vsel %vm320_vm0, %v311_v22, %v313_v36  ;;  %v277_v30 = vrot.slane %v4742_v40, %v4713_v25 }
  0x8d   : > { %v372_v41 = vmul.f32 %v335_v29, %v328_v38  ;;  %4212 = vmatmul.mubr.msk.f32.vlgmr.msra.gmra.mrb[0].mxu1 %vm383_vm2, %v4204_v34  ;;  %3589 = vrot.lane.b32.xlu1 %v4626_v6, %s4561_s29  ;;  %v376_v56 = vmul.f32 %v351_v45, %v324_v49 }
  0x8e   : > { %562 = vmatprep.mubr.f32.mxu1 %v4553_v0  ;;  %3587 = vrot.lane.b32.xlu0 %v4620_v5, %s4561_s29 }
  0x8f   : > { %v317_v46 = vpop.permute.xlu1 %316  ;;  %4207 = vmatpush1.msk.msra.mxu0 %vm390_vm1, %v372_v41  ;;  %v315_v47 = vpop.permute.xlu0 %314  ;;  %v1096_v41 = vrot.slane %v4810_v27, %v4696_v14 }
  0x90   : > { %v321_v50 = vsel %vm320_vm0, %v317_v46, %v319_v37  ;;  %v322_v51 = vsel %vm320_vm0, %v315_v47, %v317_v46  ;;  %v323_v52 = vsel %vm320_vm0, %v313_v36, %v315_v47  ;;  %4208 = vmatmul.mubr.msk.f32.vlgmr.msra.gmra.mrb[0].mxu0 %vm383_vm2, %v4204_v34  ;;  %v273_v36 = vrot.slane %v4742_v40, %v4732_v35 }
  0x91   : > { %v379_v53 = vmul.f32 %v363_v39, %v321_v50  ;;  %v377_v54 = vmul.f32 %v355_v42, %v323_v52  ;;  %v378_v55 = vmul.f32 %v359_v43, %v322_v51  ;;  %4213 = vmatmul.mubr.msk.f32.gmra.mrb[2].mxu1 %vm383_vm2, %v4205_v44  ;;  %485 = vmatprep.mubr.f32.mxu0 %v4553_v0  ;;  %v4009_v42 = vld [vmem:[%s5330_s2 + $0x8] sm:$0xff] }
  0x92   : > { %710 = vmatprep.mubr.f32.mxu1 %v4553_v0 }
  0x93   : > { %v228_v57 = vpop.permute.xlu1 %227  ;;  %4214 = vmatprep.subr.msk.mxu0 %vm390_vm1, %v377_v54  ;;  %4218 = vmatprep.subr.msk.mxu1 %vm390_vm1, %v379_v53  ;;  %v226_v58 = vpop.permute.xlu0 %225  ;;  %v1100_v53 = vrot.slane %v4810_v27, %v4688_v12  ;;  %v1104_v54 = vrot.slane %v4810_v27, %v4692_v13 }
  0x94   : > { %v250_v59 = vsel %vm243_vm3, %v226_v58, %v228_v57  ;;  %4209 = vmatmul.mubr.msk.f32.gmra.mrb[2].mxu0 %vm383_vm2, %v4205_v44  ;;  %4219 = vmatpush1.msk.msra.mxu1 %vm390_vm1, %v378_v55 }
  0x95   : > { %v295_v60 = vmul.f32 %v261_v48, %v250_v59  ;;  %4215 = vmatpush1.msk.msra.mxu0 %vm390_vm1, %v376_v56  ;;  %4220 = vmatmul.mubr.msk.f32.vlgmr.msra.gmra.mrb[4].mxu1 %vm383_vm2, %v4204_v34 }
  0x96   : > { %633 = vmatprep.mubr.f32.mxu0 %v4553_v0  ;;  %716 = vmatprep.mubr.f32.mxu1 %v4553_v0 }
  0x97   : > { %v232_v63 = vpop.permute.xlu1 %231  ;;  %4222 = vmatprep.subr.msk.mxu0 %vm390_vm1, %v295_v60  ;;  %v230_v9 = vpop.permute.xlu0 %229 }
  0x98   : > { %v248_v10 = vsel %vm243_vm3, %v230_v9, %v232_v63  ;;  %v249_v15 = vsel %vm243_vm3, %v228_v57, %v230_v9  ;;  %4216 = vmatmul.mubr.msk.f32.vlgmr.msra.gmra.mrb[4].mxu0 %vm383_vm2, %v4204_v34  ;;  %v4562_v34 = vmov 0  }
  0x99   : > { %v296_v16 = vmul.f32 %v265_v61, %v249_v15  ;;  %v297_v17 = vmul.f32 %v269_v62, %v248_v10  ;;  %4221 = vmatmul.mubr.msk.f32.gmra.mrb[6].mxu1 %vm383_vm2, %v4205_v44  ;;  %639 = vmatprep.mubr.f32.mxu0 %v4553_v0  ;;  %v1092_v61 = vrot.slane %v4810_v27, %v4701_v18  ;;  %v4239_v62 = vld [vmem:[%s5329_s1 + $0x20] sm:$0xff] }
  0x9a   : > { %894 = vmatprep.mubr.f32.mxu1 %v4553_v0  ;;  %4540 = vset.pattern.permute.xlu1 %v4562_v34  ;;  %v1120_v15 = vrot.slane %v4810_v27, %v4711_v24 }
  0x9b   : > { %v234_v21 = vpop.permute.xlu1 %233  ;;  %4226 = vmatprep.subr.msk.mxu1 %vm390_vm1, %v297_v17  ;;  %v240_v22 = vpop.permute.xlu0 %239  ;;  %4012 = vperm.xlu1 %4540, %v4008_v28  }
  0x9c   : > { %v251_v23 = vsel %vm243_vm3, %v240_v22, %v226_v58  ;;  %4217 = vmatmul.mubr.msk.f32.gmra.mrb[6].mxu0 %vm383_vm2, %v4205_v44  ;;  %4227 = vmatpush1.msk.msra.mxu1 %vm390_vm1, %v296_v16  ;;  %v247_v37 = vsel %vm243_vm3, %v232_v63, %v234_v21  ;;  %v4884_v16 = vld [vmem:[%s5331_s3 + $0x18] sm:$0xff] }
  0x9d   : > { %v294_v29 = vmul.f32 %v257_v19, %v251_v23  ;;  %4228 = vmatmul.mubr.msk.f32.vlgmr.msra.gmra.mrb[0].mxu1 %vm383_vm2, %v302_v20  ;;  %817 = vmatprep.mubr.f32.mxu0 %v4553_v0  ;;  %v298_v48 = vmul.f32 %v273_v36, %v247_v37  ;;  %v1112_v19 = vrot.slane %v4810_v27, %v4713_v25 }
  0x9e   : > { %900 = vmatprep.mubr.f32.mxu1 %v4553_v0  ;;  %4539 = vset.pattern.permute.xlu0 %v4562_v34  ;;  %v1529_v28 = vrot.slane %v4884_v16, %v4696_v14 }
  0x9f   : > { %v238_v38 = vpop.permute.xlu1 %237  ;;  %4223 = vmatpush1.msk.msra.mxu0 %vm390_vm1, %v294_v29  ;;  %v236_v39 = vpop.permute.xlu0 %235  ;;  %4017 = vperm.xlu0 %4539, %v4009_v42  }
  0xa0   : > { %v244_v43 = vsel %vm243_vm3, %v238_v38, %v240_v22  ;;  %v245_v40 = vsel %vm243_vm3, %v236_v39, %v238_v38  ;;  %v246_v44 = vsel %vm243_vm3, %v234_v21, %v236_v39  ;;  %4224 = vmatmul.mubr.msk.f32.vlgmr.msra.gmra.mrb[0].mxu0 %vm383_vm2, %v302_v20  ;;  %v4240_v21 = vld [vmem:[%s5329_s1 + $0x28] sm:$0xff]  ;;  %v1108_v22 = vrot.slane %v4810_v27, %v4732_v35 }
  0xa1   : > { %v301_v45 = vmul.f32 %v285_v26, %v244_v43  ;;  %v299_v46 = vmul.f32 %v277_v30, %v246_v44  ;;  %v300_v47 = vmul.f32 %v281_v31, %v245_v40  ;;  %4229 = vmatmul.mubr.msk.f32.gmra.mrb[2].mxu1 %vm383_vm2, %v303_v32  ;;  %823 = vmatprep.mubr.f32.mxu0 %v4553_v0 }
  0xa2   : > { %1048 = vmatprep.mubr.f32.mxu1 %v4553_v0  ;;  %v1533_v43 = vrot.slane %v4884_v16, %v4688_v12  ;;  %v1537_v40 = vrot.slane %v4884_v16, %v4692_v13 }
  0xa3   : > { %v1064_v49 = vpop.permute.xlu1 %1063  ;;  %4230 = vmatprep.subr.msk.mxu0 %vm390_vm1, %v299_v46  ;;  %4234 = vmatprep.subr.msk.mxu1 %vm390_vm1, %v301_v45  ;;  %v1062_v50 = vpop.permute.xlu0 %1061 }
  0xa4   : > { %v1084_v51 = vsel %vm1077_vm4, %v1062_v50, %v1064_v49  ;;  %4225 = vmatmul.mubr.msk.f32.gmra.mrb[2].mxu0 %vm383_vm2, %v303_v32  ;;  %4235 = vmatpush1.msk.msra.mxu1 %vm390_vm1, %v300_v47 }
  0xa5   : > { %v1130_v52 = vmul.f32 %v1096_v41, %v1084_v51  ;;  %4231 = vmatpush1.msk.msra.mxu0 %vm390_vm1, %v298_v48  ;;  %4236 = vmatmul.mubr.msk.f32.vlgmr.msra.gmra.mrb[4].mxu1 %vm383_vm2, %v302_v20  ;;  %v4258_v51 = vld [vmem:[%s5329_s1 + $0x30] sm:$0xff] }
  0xa6   : > { %971 = vmatprep.mubr.f32.mxu0 %v4553_v0  ;;  %1054 = vmatprep.mubr.f32.mxu1 %v4553_v0 }
  0xa7   : > { %v1068_v55 = vpop.permute.xlu1 %1067  ;;  %4241 = vmatprep.subr.msk.mxu0 %vm390_vm1, %v1130_v52  ;;  %v1066_v56 = vpop.permute.xlu0 %1065 }
  0xa8   : > { %v1082_v57 = vsel %vm1077_vm4, %v1066_v56, %v1068_v55  ;;  %v1083_v58 = vsel %vm1077_vm4, %v1064_v49, %v1066_v56  ;;  %4232 = vmatmul.mubr.msk.f32.vlgmr.msra.gmra.mrb[4].mxu0 %vm383_vm2, %v302_v20  ;;  %v1116_v20 = vrot.slane %v4810_v27, %v4722_v33 }
  0xa9   : > { %v1131_v59 = vmul.f32 %v1100_v53, %v1083_v58  ;;  %v1132_v60 = vmul.f32 %v1104_v54, %v1082_v57  ;;  %4237 = vmatmul.mubr.msk.f32.gmra.mrb[6].mxu1 %vm383_vm2, %v303_v32  ;;  %977 = vmatprep.mubr.f32.mxu0 %v4553_v0  ;;  %v1545_v57 = vrot.slane %v4884_v16, %v4713_v25 }
  0xaa   : > { %1311 = vmatprep.mubr.f32.mxu1 %v4553_v0  ;;  %v1549_v58 = vrot.slane %v4884_v16, %v4722_v33 }
  0xab   : > { %v1070_v63 = vpop.permute.xlu1 %1069  ;;  %4245 = vmatprep.subr.msk.mxu1 %vm390_vm1, %v1132_v60  ;;  %v1076_v9 = vpop.permute.xlu0 %1075  ;;  %v1541_v60 = vrot.slane %v4884_v16, %v4732_v35 }
  0xac   : > { %v1085_v10 = vsel %vm1077_vm4, %v1076_v9, %v1062_v50  ;;  %4233 = vmatmul.mubr.msk.f32.gmra.mrb[6].mxu0 %vm383_vm2, %v303_v32  ;;  %4246 = vmatpush1.msk.msra.mxu1 %vm390_vm1, %v1131_v59  ;;  %v1081_v29 = vsel %vm1077_vm4, %v1068_v55, %v1070_v63  ;;  %v1525_v50 = vrot.slane %v4884_v16, %v4701_v18  ;;  %v4259_v59 = vld [vmem:[%s5329_s1 + $0x38] sm:$0xff] }
  0xad   : > { %v1129_v17 = vmul.f32 %v1092_v61, %v1085_v10  ;;  %4247 = vmatmul.mubr.msk.f32.vlgmr.msra.gmra.mrb[0].mxu1 %vm383_vm2, %v4239_v62  ;;  %1234 = vmatprep.mubr.f32.mxu0 %v4553_v0  ;;  %v1133_v37 = vmul.f32 %v1108_v22, %v1081_v29  ;;  %v1553_v55 = vrot.slane %v4884_v16, %v4711_v24 }
  0xae   : > { %1317 = vmatprep.mubr.f32.mxu1 %v4553_v0 }
  0xaf   : > { %v1074_v23 = vpop.permute.xlu1 %1073  ;;  %4242 = vmatpush1.msk.msra.mxu0 %vm390_vm1, %v1129_v17  ;;  %v1072_v26 = vpop.permute.xlu0 %1071 }
  0xb0   : > { %v1078_v30 = vsel %vm1077_vm4, %v1074_v23, %v1076_v9  ;;  %v1079_v31 = vsel %vm1077_vm4, %v1072_v26, %v1074_v23  ;;  %v1080_v32 = vsel %vm1077_vm4, %v1070_v63, %v1072_v26  ;;  %4243 = vmatmul.mubr.msk.f32.vlgmr.msra.gmra.mrb[0].mxu0 %vm383_vm2, %v4239_v62 }
  0xb1   : > { %v1136_v27 = vmul.f32 %v1120_v15, %v1078_v30  ;;  %v1134_v34 = vmul.f32 %v1112_v19, %v1080_v32  ;;  %v1135_v36 = vmul.f32 %v1116_v20, %v1079_v31  ;;  %4248 = vmatmul.mubr.msk.f32.gmra.mrb[2].mxu1 %vm383_vm2, %v4240_v21  ;;  %1240 = vmatprep.mubr.f32.mxu0 %v4553_v0 }
  0xb2   : > { %1465 = vmatprep.mubr.f32.mxu1 %v4553_v0 }
  0xb3   : > { %v1497_v38 = vpop.permute.xlu1 %1496  ;;  %4249 = vmatprep.subr.msk.mxu0 %vm390_vm1, %v1134_v34  ;;  %4253 = vmatprep.subr.msk.mxu1 %vm390_vm1, %v1136_v27  ;;  %v1495_v39 = vpop.permute.xlu0 %1494 }
  0xb4   : > { %v1517_v41 = vsel %vm1510_vm5, %v1495_v39, %v1497_v38  ;;  %4244 = vmatmul.mubr.msk.f32.gmra.mrb[2].mxu0 %vm383_vm2, %v4240_v21  ;;  %4254 = vmatpush1.msk.msra.mxu1 %vm390_vm1, %v1135_v36 }
  0xb5   : > { %v1563_v42 = vmul.f32 %v1529_v28, %v1517_v41  ;;  %4250 = vmatpush1.msk.msra.mxu0 %vm390_vm1, %v1133_v37  ;;  %4255 = vmatmul.mubr.msk.f32.vlgmr.msra.gmra.mrb[4].mxu1 %vm383_vm2, %v4239_v62  ;;  %v4992_v28 = vld [vmem:[%s5331_s3 + $0x28] sm:$0xff] }
  0xb6   : > { %1388 = vmatprep.mubr.f32.mxu0 %v4553_v0  ;;  %1471 = vmatprep.mubr.f32.mxu1 %v4553_v0  ;;  %v2335_v36 = vrot.slane %v4992_v28, %v4711_v24 }
  0xb7   : > { %v1501_v44 = vpop.permute.xlu1 %1500  ;;  %4260 = vmatprep.subr.msk.mxu0 %vm390_vm1, %v1563_v42  ;;  %v1499_v45 = vpop.permute.xlu0 %1498 }
  0xb8   : > { %v1515_v46 = vsel %vm1510_vm5, %v1499_v45, %v1501_v44  ;;  %v1516_v47 = vsel %vm1510_vm5, %v1497_v38, %v1499_v45  ;;  %4251 = vmatmul.mubr.msk.f32.vlgmr.msra.gmra.mrb[4].mxu0 %vm383_vm2, %v4239_v62 }
  0xb9   : > { %v1564_v48 = vmul.f32 %v1533_v43, %v1516_v47  ;;  %v1565_v49 = vmul.f32 %v1537_v40, %v1515_v46  ;;  %4256 = vmatmul.mubr.msk.f32.gmra.mrb[6].mxu1 %vm383_vm2, %v4240_v21  ;;  %1394 = vmatprep.mubr.f32.mxu0 %v4553_v0  ;;  %v2327_v40 = vrot.slane %v4992_v28, %v4713_v25 }
  0xba   : > { %1744 = vmatprep.mubr.f32.mxu1 %v4553_v0 }
  0xbb   : > { %v1503_v52 = vpop.permute.xlu1 %1502  ;;  %4264 = vmatprep.subr.msk.mxu1 %vm390_vm1, %v1565_v49  ;;  %v1509_v53 = vpop.permute.xlu0 %1508 }
  0xbc   : > { %v1518_v54 = vsel %vm1510_vm5, %v1509_v53, %v1495_v39  ;;  %4252 = vmatmul.mubr.msk.f32.gmra.mrb[6].mxu0 %vm383_vm2, %v4240_v21  ;;  %4265 = vmatpush1.msk.msra.mxu1 %vm390_vm1, %v1564_v48  ;;  %v1514_v63 = vsel %vm1510_vm5, %v1501_v44, %v1503_v52 }
  0xbd   : > { %v1562_v56 = vmul.f32 %v1525_v50, %v1518_v54  ;;  %4266 = vmatmul.mubr.msk.f32.vlgmr.msra.gmra.mrb[0].mxu1 %vm383_vm2, %v4258_v51  ;;  %1667 = vmatprep.mubr.f32.mxu0 %v4553_v0  ;;  %v1566_v20 = vmul.f32 %v1541_v60, %v1514_v63 }
  0xbe   : > { %1750 = vmatprep.mubr.f32.mxu1 %v4553_v0 }
  0xbf   : > { %v1507_v61 = vpop.permute.xlu1 %1506  ;;  %4261 = vmatpush1.msk.msra.mxu0 %vm390_vm1, %v1562_v56  ;;  %v1505_v62 = vpop.permute.xlu0 %1504 }
  0xc0   : > { %v1511_v9 = vsel %vm1510_vm5, %v1507_v61, %v1509_v53  ;;  %v1512_v10 = vsel %vm1510_vm5, %v1505_v62, %v1507_v61  ;;  %v1513_v15 = vsel %vm1510_vm5, %v1503_v52, %v1505_v62  ;;  %4262 = vmatmul.mubr.msk.f32.vlgmr.msra.gmra.mrb[0].mxu0 %vm383_vm2, %v4258_v51  ;;  %v5062_v52 = vld [vmem:[%s5331_s3 + $0x30] sm:$0xff]  ;;  %v2323_v53 = vrot.slane %v4992_v28, %v4732_v35 }
  0xc1   : > { %v1569_v17 = vmul.f32 %v1553_v55, %v1511_v9  ;;  %v1567_v16 = vmul.f32 %v1545_v57, %v1513_v15  ;;  %v1568_v19 = vmul.f32 %v1549_v58, %v1512_v10  ;;  %4267 = vmatmul.mubr.msk.f32.gmra.mrb[2].mxu1 %vm383_vm2, %v4259_v59  ;;  %1673 = vmatprep.mubr.f32.mxu0 %v4553_v0  ;;  %v4295_v57 = vld [vmem:[%s5329_s1 + $0x50] sm:$0xff]  ;;  %v4296_v15 = vld [vmem:[%s5329_s1 + $0x58] sm:$0xff] }
  0xc2   : > { %1898 = vmatprep.mubr.f32.mxu1 %v4553_v0  ;;  %v2752_v54 = vrot.slane %v5062_v52, %v4692_v13  ;;  %v2744_v58 = vrot.slane %v5062_v52, %v4696_v14  ;;  %v2748_v10 = vrot.slane %v5062_v52, %v4688_v12 }
  0xc3   : > { %4268 = vmatprep.subr.msk.mxu0 %vm390_vm1, %v1567_v16  ;;  %4272 = vmatprep.subr.msk.mxu1 %vm390_vm1, %v1569_v17  ;;  %v2281_v21 = vpop.permute.xlu1 %2280  ;;  %v2279_v22 = vpop.permute.xlu0 %2278 }
  0xc4   : > { %4263 = vmatmul.mubr.msk.f32.gmra.mrb[2].mxu0 %vm383_vm2, %v4259_v59  ;;  %4273 = vmatpush1.msk.msra.mxu1 %vm390_vm1, %v1568_v19  ;;  %v2298_v31 = vsel %vm2292_vm6, %v2279_v22, %v2281_v21  ;;  %v2768_v19 = vrot.slane %v5062_v52, %v4711_v24 }
  0xc5   : > { %4269 = vmatpush1.msk.msra.mxu0 %vm390_vm1, %v1566_v20  ;;  %4274 = vmatmul.mubr.msk.f32.vlgmr.msra.gmra.mrb[4].mxu1 %vm383_vm2, %v4258_v51 }
  0xc6   : > { %1821 = vmatprep.mubr.f32.mxu0 %v4553_v0  ;;  %1904 = vmatprep.mubr.f32.mxu1 %v4553_v0 }
  0xc7   : > { %4282 = vmatprep.subr.msk.mxu1 %vm390_vm1, %v4614_v3  ;;  %4278 = vmatprep.subr.msk.mxu0 %vm390_vm1, %v4618_v4  ;;  %v2283_v23 = vpop.permute.xlu1 %2282  ;;  %v2277_v26 = vpop.permute.xlu0 %2276  ;;  %v2319_v3 = vrot.slane %v4992_v28, %v4692_v13  ;;  %v2311_v4 = vrot.slane %v4992_v28, %v4696_v14 }
  0xc8   : > { %4270 = vmatmul.mubr.msk.f32.vlgmr.msra.gmra.mrb[4].mxu0 %vm383_vm2, %v4258_v51  ;;  %4283 = vmatpush1.msk.msra.mxu1 %vm390_vm1, %v4606_v1  ;;  %v4276_v1 = vld [vmem:[%s5329_s1 + $0x40] sm:$0xff]  ;;  %v2297_v34 = vsel %vm2292_vm6, %v2281_v21, %v2283_v23  ;;  %v2299_v42 = vsel %vm2292_vm6, %v2277_v26, %v2279_v22 }
  0xc9   : > { %4275 = vmatmul.mubr.msk.f32.gmra.mrb[6].mxu1 %vm383_vm2, %v4259_v59  ;;  %1827 = vmatprep.mubr.f32.mxu0 %v4553_v0  ;;  %v2345_v27 = vmul.f32 %v2311_v4, %v2298_v31 }
  0xca   : > { %2093 = vmatprep.mubr.f32.mxu1 %v4553_v0  ;;  %4279 = vmatpush1.msk.msra.mxu0 %vm390_vm1, %v4608_v2 }
  0xcb   : > { %v2287_v29 = vpop.permute.xlu1 %2286  ;;  %4290 = vmatprep.subr.msk.mxu1 %vm390_vm1, %v4626_v6  ;;  %4286 = vmatprep.subr.msk.mxu0 %vm390_vm1, %v4634_v8  ;;  %v2285_v30 = vpop.permute.xlu0 %2284  ;;  %v2315_v6 = vrot.slane %v4992_v28, %v4688_v12  ;;  %v4277_v8 = vld [vmem:[%s5329_s1 + $0x48] sm:$0xff] }
  0xcc   : > { %4271 = vmatmul.mubr.msk.f32.gmra.mrb[6].mxu0 %vm383_vm2, %v4259_v59  ;;  %v2296_v32 = vsel %vm2292_vm6, %v2283_v23, %v2285_v30  ;;  %v2295_v55 = vsel %vm2292_vm6, %v2285_v30, %v2287_v29  ;;  %v2740_v23 = vrot.slane %v5062_v52, %v4701_v18 }
  0xcd   : > { %4284 = vmatmul.mubr.msk.f32.vlgmr.msra.gmra.mrb[0].mxu1 %vm383_vm2, %v4276_v1  ;;  %2016 = vmatprep.mubr.f32.mxu0 %v4553_v0  ;;  %v2347_v2 = vmul.f32 %v2319_v3, %v2296_v32  ;;  %v2346_v41 = vmul.f32 %v2315_v6, %v2297_v34  ;;  %v2348_v63 = vmul.f32 %v2323_v53, %v2295_v55  ;;  %v5130_v34 = vld [vmem:[%s5331_s3 + $0x38] sm:$0xff] }
  0xce   : > { %2099 = vmatprep.mubr.f32.mxu1 %v4553_v0  ;;  %4291 = vmatpush1.msk.msra.mxu1 %vm390_vm1, %v4620_v5  ;;  %v2307_v5 = vrot.slane %v4992_v28, %v4701_v18  ;;  %v2764_v32 = vrot.slane %v5062_v52, %v4722_v33 }
  0xcf   : > { %v2291_v37 = vpop.permute.xlu1 %2290  ;;  %4301 = vmatprep.subr.msk.mxu1 %vm390_vm1, %v2347_v2  ;;  %v2289_v38 = vpop.permute.xlu0 %2288 }
  0xd0   : > { %4280 = vmatmul.mubr.msk.f32.vlgmr.msra.gmra.mrb[0].mxu0 %vm383_vm2, %v4276_v1  ;;  %v2300_v39 = vsel %vm2292_vm6, %v2291_v37, %v2277_v26  ;;  %v2294_v46 = vsel %vm2292_vm6, %v2287_v29, %v2289_v38  ;;  %v2344_v47 = vmul.f32 %v2307_v5, %v2299_v42  ;;  %v2293_v48 = vsel %vm2292_vm6, %v2289_v38, %v2291_v37  ;;  %v4314_v5 = vld [vmem:[%s5329_s1 + $0x60] sm:$0xff] }
  0xd1   : > { %4285 = vmatmul.mubr.msk.f32.gmra.mrb[2].mxu1 %vm383_vm2, %v4277_v8  ;;  %2022 = vmatprep.mubr.f32.mxu0 %v4553_v0  ;;  %v2351_v43 = vmul.f32 %v2335_v36, %v2300_v39  ;;  %v2349_v49 = vmul.f32 %v2327_v40, %v2294_v46  ;;  %v2756_v36 = vrot.slane %v5062_v52, %v4732_v35 }
  0xd2   : > { %2247 = vmatprep.mubr.f32.mxu1 %v4553_v0  ;;  %4287 = vmatpush1.msk.msra.mxu0 %vm390_vm1, %v4628_v7  ;;  %v2331_v7 = vrot.slane %v4992_v28, %v4722_v33  ;;  %v3185_v37 = vrot.slane %v5130_v34, %v4692_v13 }
  0xd3   : > { %4297 = vmatprep.subr.msk.mxu0 %vm390_vm1, %v2345_v27  ;;  %v2714_v44 = vpop.permute.xlu1 %2713  ;;  %v2712_v45 = vpop.permute.xlu0 %2711 }
  0xd4   : > { %4281 = vmatmul.mubr.msk.f32.gmra.mrb[2].mxu0 %vm383_vm2, %v4277_v8  ;;  %v2350_v56 = vmul.f32 %v2331_v7, %v2293_v48  ;;  %v2731_v61 = vsel %vm2725_vm7, %v2712_v45, %v2714_v44  ;;  %v4315_v7 = vld [vmem:[%s5329_s1 + $0x68] sm:$0xff] }
  0xd5   : > { %4292 = vmatmul.mubr.msk.f32.vlgmr.msra.gmra.mrb[4].mxu1 %vm383_vm2, %v4276_v1  ;;  %2170 = vmatprep.mubr.f32.mxu0 %v4553_v0  ;;  %v2778_v17 = vmul.f32 %v2744_v58, %v2731_v61  ;;  %v3193_v58 = vrot.slane %v5130_v34, %v4713_v25 }
  0xd6   : > { %2253 = vmatprep.mubr.f32.mxu1 %v4553_v0  ;;  %4302 = vmatpush1.msk.msra.mxu1 %vm390_vm1, %v2346_v41  ;;  %v3177_v41 = vrot.slane %v5130_v34, %v4696_v14 }
  0xd7   : > { %4309 = vmatprep.subr.msk.mxu1 %vm390_vm1, %v2351_v43  ;;  %v2716_v50 = vpop.permute.xlu1 %2715  ;;  %v2710_v51 = vpop.permute.xlu0 %2709 }
  0xd8   : > { %4288 = vmatmul.mubr.msk.f32.vlgmr.msra.gmra.mrb[4].mxu0 %vm383_vm2, %v4276_v1  ;;  %v2730_v16 = vsel %vm2725_vm7, %v2714_v44, %v2716_v50  ;;  %v2732_v28 = vsel %vm2725_vm7, %v2710_v51, %v2712_v45  ;;  %v2760_v1 = vrot.slane %v5062_v52, %v4713_v25 }
  0xd9   : > { %4298 = vmatpush1.msk.msra.mxu0 %vm390_vm1, %v2344_v47  ;;  %4293 = vmatmul.mubr.msk.f32.gmra.mrb[6].mxu1 %vm383_vm2, %v4277_v8  ;;  %v2779_v26 = vmul.f32 %v2748_v10, %v2730_v16  ;;  %v2777_v31 = vmul.f32 %v2740_v23, %v2732_v28  ;;  %v3181_v47 = vrot.slane %v5130_v34, %v4688_v12  ;;  %v5198_v16 = vld [vmem:[%s5331_s3 + $0x40] sm:$0xff]  ;;  %v4333_v23 = vld [vmem:[%s5329_s1 + $0x70] sm:$0xff] }
  0xda   : > { %2176 = vmatprep.mubr.f32.mxu0 %v4553_v0  ;;  %2526 = vmatprep.mubr.f32.mxu1 %v4553_v0 }
  0xdb   : > { %4305 = vmatprep.subr.msk.mxu0 %vm390_vm1, %v2349_v49  ;;  %v2720_v59 = vpop.permute.xlu1 %2719  ;;  %v2718_v60 = vpop.permute.xlu0 %2717 }
  0xdc   : > { %4289 = vmatmul.mubr.msk.f32.gmra.mrb[6].mxu0 %vm383_vm2, %v4277_v8  ;;  %v2729_v62 = vsel %vm2725_vm7, %v2716_v50, %v2718_v60  ;;  %v2728_v38 = vsel %vm2725_vm7, %v2718_v60, %v2720_v59  ;;  %v3201_v50 = vrot.slane %v5130_v34, %v4711_v24 }
  0xdd   : > { %4303 = vmatmul.mubr.msk.f32.vlgmr.msra.gmra.mrb[0].mxu1 %vm383_vm2, %v4295_v57  ;;  %2449 = vmatprep.mubr.f32.mxu0 %v4553_v0  ;;  %v2780_v9 = vmul.f32 %v2752_v54, %v2729_v62  ;;  %v2781_v45 = vmul.f32 %v2756_v36, %v2728_v38  ;;  %v3173_v54 = vrot.slane %v5130_v34, %v4701_v18 }
  0xde   : > { %2532 = vmatprep.mubr.f32.mxu1 %v4553_v0  ;;  %4310 = vmatpush1.msk.msra.mxu1 %vm390_vm1, %v2350_v56 }
  0xdf   : > { %v2724_v20 = vpop.permute.xlu1 %2723  ;;  %4320 = vmatprep.subr.msk.mxu1 %vm390_vm1, %v2780_v9  ;;  %v2722_v21 = vpop.permute.xlu0 %2721 }
  0xe0   : > { %4299 = vmatmul.mubr.msk.f32.vlgmr.msra.gmra.mrb[0].mxu0 %vm383_vm2, %v4295_v57  ;;  %v2733_v22 = vsel %vm2725_vm7, %v2724_v20, %v2710_v51  ;;  %v2727_v30 = vsel %vm2725_vm7, %v2720_v59, %v2722_v21  ;;  %v2726_v2 = vsel %vm2725_vm7, %v2722_v21, %v2724_v20  ;;  %v3618_v20 = vrot.slane %v5198_v16, %v4692_v13 }
  0xe1   : > { %4306 = vmatpush1.msk.msra.mxu0 %vm390_vm1, %v2348_v63  ;;  %4304 = vmatmul.mubr.msk.f32.gmra.mrb[2].mxu1 %vm383_vm2, %v4296_v15  ;;  %v2784_v3 = vmul.f32 %v2768_v19, %v2733_v22  ;;  %v2782_v6 = vmul.f32 %v2760_v1, %v2727_v30  ;;  %v2783_v39 = vmul.f32 %v2764_v32, %v2726_v2  ;;  %v4334_v30 = vld [vmem:[%s5329_s1 + $0x78] sm:$0xff] }
  0xe2   : > { %2455 = vmatprep.mubr.f32.mxu0 %v4553_v0  ;;  %2680 = vmatprep.mubr.f32.mxu1 %v4553_v0  ;;  %v3197_v63 = vrot.slane %v5130_v34, %v4722_v33  ;;  %v3189_v19 = vrot.slane %v5130_v34, %v4732_v35  ;;  %v3634_v2 = vrot.slane %v5198_v16, %v4711_v24 }
  0xe3   : > { %4316 = vmatprep.subr.msk.mxu0 %vm390_vm1, %v2778_v17  ;;  %v3147_v4 = vpop.permute.xlu1 %3146  ;;  %v3145_v29 = vpop.permute.xlu0 %3144 }
  0xe4   : > { %4300 = vmatmul.mubr.msk.f32.gmra.mrb[2].mxu0 %vm383_vm2, %v4296_v15  ;;  %v3164_v40 = vsel %vm3158_vm8, %v3145_v29, %v3147_v4 }
  0xe5   : > { %4311 = vmatmul.mubr.msk.f32.vlgmr.msra.gmra.mrb[4].mxu1 %vm383_vm2, %v4295_v57  ;;  %2603 = vmatprep.mubr.f32.mxu0 %v4553_v0  ;;  %v3211_v48 = vmul.f32 %v3177_v41, %v3164_v40  ;;  %v3622_v41 = vrot.slane %v5198_v16, %v4732_v35 }
  0xe6   : > { %2686 = vmatprep.mubr.f32.mxu1 %v4553_v0  ;;  %4321 = vmatpush1.msk.msra.mxu1 %vm390_vm1, %v2779_v26  ;;  %v3610_v26 = vrot.slane %v5198_v16, %v4696_v14  ;;  %v3614_v14 = vrot.slane %v5198_v16, %v4688_v12 }
  0xe7   : > { %4328 = vmatprep.subr.msk.mxu1 %vm390_vm1, %v2784_v3  ;;  %v3149_v8 = vpop.permute.xlu1 %3148  ;;  %v3143_v27 = vpop.permute.xlu0 %3142 }
  0xe8   : > { %4307 = vmatmul.mubr.msk.f32.vlgmr.msra.gmra.mrb[4].mxu0 %vm383_vm2, %v4295_v57  ;;  %v3163_v49 = vsel %vm3158_vm8, %v3147_v4, %v3149_v8  ;;  %v3165_v56 = vsel %vm3158_vm8, %v3143_v27, %v3145_v29 }
  0xe9   : > { %4317 = vmatpush1.msk.msra.mxu0 %vm390_vm1, %v2777_v31  ;;  %4312 = vmatmul.mubr.msk.f32.gmra.mrb[6].mxu1 %vm383_vm2, %v4296_v15  ;;  %v3212_v55 = vmul.f32 %v3181_v47, %v3163_v49  ;;  %v3210_v62 = vmul.f32 %v3173_v54, %v3165_v56 }
  0xea   : > { %2609 = vmatprep.mubr.f32.mxu0 %v4553_v0  ;;  %2959 = vmatprep.mubr.f32.mxu1 %v4553_v0 }
  0xeb   : > { %4324 = vmatprep.subr.msk.mxu0 %vm390_vm1, %v2782_v6  ;;  %v3153_v42 = vpop.permute.xlu1 %3152  ;;  %v3151_v43 = vpop.permute.xlu0 %3150 }
  0xec   : > { %4308 = vmatmul.mubr.msk.f32.gmra.mrb[6].mxu0 %vm383_vm2, %v4296_v15  ;;  %v3162_v44 = vsel %vm3158_vm8, %v3149_v8, %v3151_v43  ;;  %v3161_v21 = vsel %vm3158_vm8, %v3151_v43, %v3153_v42  ;;  %v3606_v8 = vrot.slane %v5198_v16, %v4701_v18  ;;  %v4352_v43 = vld [vmem:[%s5329_s1 + $0x80] sm:$0xff] }
  0xed   : > { %4322 = vmatmul.mubr.msk.f32.vlgmr.msra.gmra.mrb[0].mxu1 %vm383_vm2, %v4314_v5  ;;  %2882 = vmatprep.mubr.f32.mxu0 %v4553_v0  ;;  %v3213_v46 = vmul.f32 %v3185_v37, %v3162_v44  ;;  %v3214_v4 = vmul.f32 %v3189_v19, %v3161_v21  ;;  %v3626_v37 = vrot.slane %v5198_v16, %v4713_v25 }
  0xee   : > { %2965 = vmatprep.mubr.f32.mxu1 %v4553_v0  ;;  %4329 = vmatpush1.msk.msra.mxu1 %vm390_vm1, %v2783_v39  ;;  %v3630_v39 = vrot.slane %v5198_v16, %v4722_v33 }
  0xef   : > { %v3157_v51 = vpop.permute.xlu1 %3156  ;;  %4339 = vmatprep.subr.msk.mxu1 %vm390_vm1, %v3213_v46  ;;  %v3155_v52 = vpop.permute.xlu0 %3154 }
  0xf0   : > { %4318 = vmatmul.mubr.msk.f32.vlgmr.msra.gmra.mrb[0].mxu0 %vm383_vm2, %v4314_v5  ;;  %v3166_v53 = vsel %vm3158_vm8, %v3157_v51, %v3143_v27  ;;  %v3160_v61 = vsel %vm3158_vm8, %v3153_v42, %v3155_v52  ;;  %v3159_v9 = vsel %vm3158_vm8, %v3155_v52, %v3157_v51 }
  0xf1   : > { %4325 = vmatpush1.msk.msra.mxu0 %vm390_vm1, %v2781_v45  ;;  %4323 = vmatmul.mubr.msk.f32.gmra.mrb[2].mxu1 %vm383_vm2, %v4315_v7  ;;  %v3217_v57 = vmul.f32 %v3201_v50, %v3166_v53  ;;  %v3215_v10 = vmul.f32 %v3193_v58, %v3160_v61  ;;  %v3216_v22 = vmul.f32 %v3197_v63, %v3159_v9 }
  0xf2   : > { %2888 = vmatprep.mubr.f32.mxu0 %v4553_v0  ;;  %3113 = vmatprep.mubr.f32.mxu1 %v4553_v0 }
  0xf3   : > { %4335 = vmatprep.subr.msk.mxu0 %vm390_vm1, %v3211_v48  ;;  %v3580_v59 = vpop.permute.xlu1 %3579  ;;  %v3578_v60 = vpop.permute.xlu0 %3577 }
  0xf4   : > { %4319 = vmatmul.mubr.msk.f32.gmra.mrb[2].mxu0 %vm383_vm2, %v4315_v7  ;;  %v3597_v13 = vsel %vm3591_vm9, %v3578_v60, %v3580_v59 }
  0xf5   : > { %4330 = vmatmul.mubr.msk.f32.vlgmr.msra.gmra.mrb[4].mxu1 %vm383_vm2, %v4314_v5  ;;  %3036 = vmatprep.mubr.f32.mxu0 %v4553_v0  ;;  %v3644_v31 = vmul.f32 %v3610_v26, %v3597_v13 }
  0xf6   : > { %3119 = vmatprep.mubr.f32.mxu1 %v4553_v0  ;;  %4340 = vmatpush1.msk.msra.mxu1 %vm390_vm1, %v3212_v55 }
  0xf7   : > { %4347 = vmatprep.subr.msk.mxu1 %vm390_vm1, %v3217_v57  ;;  %v3582_v15 = vpop.permute.xlu1 %3581  ;;  %v3576_v17 = vpop.permute.xlu0 %3575 }
  0xf8   : > { %4326 = vmatmul.mubr.msk.f32.vlgmr.msra.gmra.mrb[4].mxu0 %vm383_vm2, %v4314_v5  ;;  %v3596_v32 = vsel %vm3591_vm9, %v3580_v59, %v3582_v15  ;;  %v3598_v24 = vsel %vm3591_vm9, %v3576_v17, %v3578_v60 }
  0xf9   : > { %4336 = vmatpush1.msk.msra.mxu0 %vm390_vm1, %v3210_v62  ;;  %4331 = vmatmul.mubr.msk.f32.gmra.mrb[6].mxu1 %vm383_vm2, %v4315_v7  ;;  %v3645_v34 = vmul.f32 %v3614_v14, %v3596_v32  ;;  %v3643_v38 = vmul.f32 %v3606_v8, %v3598_v24 }
  0xfa   : > { %3042 = vmatprep.mubr.f32.mxu0 %v4553_v0  ;;  %3392 = vmatprep.mubr.f32.mxu1 %v4553_v0 }
  0xfb   : > { %4343 = vmatprep.subr.msk.mxu0 %vm390_vm1, %v3215_v10  ;;  %v3586_v28 = vpop.permute.xlu1 %3585  ;;  %v3584_v3 = vpop.permute.xlu0 %3583 }
  0xfc   : > { %4327 = vmatmul.mubr.msk.f32.gmra.mrb[6].mxu0 %vm383_vm2, %v4315_v7  ;;  %v3595_v1 = vsel %vm3591_vm9, %v3582_v15, %v3584_v3  ;;  %v3594_v42 = vsel %vm3591_vm9, %v3584_v3, %v3586_v28 }
  0xfd   : > { %4341 = vmatmul.mubr.msk.f32.vlgmr.msra.gmra.mrb[0].mxu1 %vm383_vm2, %v4333_v23  ;;  %3315 = vmatprep.mubr.f32.mxu0 %v4553_v0  ;;  %v3646_v29 = vmul.f32 %v3618_v20, %v3595_v1  ;;  %v3647_v35 = vmul.f32 %v3622_v41, %v3594_v42 }
  0xfe   : > { %3398 = vmatprep.mubr.f32.mxu1 %v4553_v0  ;;  %4348 = vmatpush1.msk.msra.mxu1 %vm390_vm1, %v3216_v22 }
  0xff   : > { %v3590_v6 = vpop.permute.xlu1 %3589  ;;  %4358 = vmatprep.subr.msk.mxu1 %vm390_vm1, %v3646_v29 }
 0x100   : > { %4337 = vmatmul.mubr.msk.f32.vlgmr.msra.gmra.mrb[0].mxu0 %vm383_vm2, %v4333_v23  ;;  %v3599_v12 = vsel %vm3591_vm9, %v3590_v6, %v3576_v17  ;;  %v3588_v27 = vpop.permute.xlu0 %3587 }
 0x101   : > { %4344 = vmatpush1.msk.msra.mxu0 %vm390_vm1, %v3214_v4  ;;  %4342 = vmatmul.mubr.msk.f32.gmra.mrb[2].mxu1 %vm383_vm2, %v4334_v30  ;;  %v3650_v36 = vmul.f32 %v3634_v2, %v3599_v12  ;;  %v3593_v18 = vsel %vm3591_vm9, %v3586_v28, %v3588_v27  ;;  %v3592_v25 = vsel %vm3591_vm9, %v3588_v27, %v3590_v6 }
 0x102   : > { %3321 = vmatprep.mubr.f32.mxu0 %v4553_v0  ;;  %3546 = vmatprep.mubr.f32.mxu1 %v4553_v0  ;;  %v3648_v5 = vmul.f32 %v3626_v37, %v3593_v18  ;;  %v3649_v33 = vmul.f32 %v3630_v39, %v3592_v25 }
 0x103   : > { %4354 = vmatprep.subr.msk.mxu0 %vm390_vm1, %v3644_v31 }
 0x104   : > { %4338 = vmatmul.mubr.msk.f32.gmra.mrb[2].mxu0 %vm383_vm2, %v4334_v30 }
 0x105   : > { %4349 = vmatmul.mubr.msk.f32.vlgmr.msra.gmra.mrb[4].mxu1 %vm383_vm2, %v4333_v23  ;;  %3469 = vmatprep.mubr.f32.mxu0 %v4553_v0 }
 0x106   : > { %3552 = vmatprep.mubr.f32.mxu1 %v4553_v0  ;;  %4359 = vmatpush1.msk.msra.mxu1 %vm390_vm1, %v3645_v34 }
 0x107   : > { %4366 = vmatprep.subr.msk.mxu1 %vm390_vm1, %v3650_v36 }
 0x108   : > { %4345 = vmatmul.mubr.msk.f32.vlgmr.msra.gmra.mrb[4].mxu0 %vm383_vm2, %v4333_v23 }
 0x109   : > { %4355 = vmatpush1.msk.msra.mxu0 %vm390_vm1, %v3643_v38  ;;  %4350 = vmatmul.mubr.msk.f32.gmra.mrb[6].mxu1 %vm383_vm2, %v4334_v30 }
 0x10a   : > { %3475 = vmatprep.mubr.f32.mxu0 %v4553_v0  ;;  %3825 = vmatprep.mubr.f32.mxu1 %v4553_v0 }
 0x10b   : > { %4362 = vmatprep.subr.msk.mxu0 %vm390_vm1, %v3648_v5 }
 0x10c   : > { %4346 = vmatmul.mubr.msk.f32.gmra.mrb[6].mxu0 %vm383_vm2, %v4334_v30 }
 0x10d   : > { %4360 = vmatmul.mubr.msk.f32.vlgmr.msra.gmra.mrb[0].mxu1 %vm383_vm2, %v4352_v43  ;;  %3748 = vmatprep.mubr.f32.mxu0 %v4553_v0 }
 0x10e   : > { %3831 = vmatprep.mubr.f32.mxu1 %v4553_v0  ;;  %4367 = vmatpush1.msk.msra.mxu1 %vm390_vm1, %v3649_v33 }
 0x110   : > { %4356 = vmatmul.mubr.msk.f32.vlgmr.msra.gmra.mrb[0].mxu0 %vm383_vm2, %v4352_v43 }
 0x111   : > { %4363 = vmatpush1.msk.msra.mxu0 %vm390_vm1, %v3647_v35  ;;  %4361 = vmatmul.mubr.msk.f32.gmra.mrb[2].mxu1 %vm383_vm2, %v4353_v11 }
 0x112   : > { %3754 = vmatprep.mubr.f32.mxu0 %v4553_v0  ;;  %3979 = vmatprep.mubr.f32.mxu1 %v4553_v0 }
 0x114   : > { %4357 = vmatmul.mubr.msk.f32.gmra.mrb[2].mxu0 %vm383_vm2, %v4353_v11 }
 0x115   : > { %4368 = vmatmul.mubr.msk.f32.vlgmr.msra.gmra.mrb[4].mxu1 %vm383_vm2, %v4352_v43  ;;  %3902 = vmatprep.mubr.f32.mxu0 %v4553_v0 }
 0x116   : > { %3985 = vmatprep.mubr.f32.mxu1 %v4553_v0 }
 0x118   : > { %4364 = vmatmul.mubr.msk.f32.vlgmr.msra.gmra.mrb[4].mxu0 %vm383_vm2, %v4352_v43 }
 0x119   : > { %4369 = vmatmul.mubr.msk.f32.gmra.mrb[6].mxu1 %vm383_vm2, %v4353_v11  ;;  %3908 = vmatprep.mubr.f32.mxu0 %v4553_v0 }
 0x11a   : > { %v5296_v50 = vpop.permute.xlu1 %4012 }
 0x11c   : > { %4365 = vmatmul.mubr.msk.f32.gmra.mrb[6].mxu0 %vm383_vm2, %v4353_v11 }
 0x11e   : > { %v4018_v45 = vpop.permute.xlu0 %4017 }
 0x1e0   : > { %v3827_v40 = vpop.f32.mrb[0].mxu1 }
 0x1e1   : > { %v3829_v44 = vpop.f32.mrb[1].mxu1  ;;  %v4022_v60 = vadd.f32 %v5296_v50, %v3827_v40 }
 0x1e2   : > { %v4023_v9 = vadd.f32 %v5296_v50, %v3829_v44 }
 0x1e3   : > { %v3750_v46 = vpop.f32.mrb[0].mxu0 }
 0x1e4   : > { %v3752_v47 = vpop.f32.mrb[1].mxu0  ;;  %v3833_v7 = vpop.f32.mrb[2].mxu1  ;;  %v4020_v22 = vadd.f32 %v5296_v50, %v3750_v46 }
 0x1e5   : > { %v4030_v48 = vadd.f32 %v4018_v45, %v3833_v7  ;;  %v3835_v49 = vpop.f32.mrb[3].mxu1  ;;  %v4021_v23 = vadd.f32 %v5296_v50, %v3752_v47 }
 0x1e6   : > { %v4031_v51 = vadd.f32 %v4018_v45, %v3835_v49 }
 0x1e7   : > { %v4038_v52 = vmul.f32 0.2, %v4030_v48  ;;  %v4046_v53 = vsub.f32 1.0, %v4030_v48  ;;  %v3756_v54 = vpop.f32.mrb[2].mxu0 }
 0x1e8   : > { %v4039_v55 = vmul.f32 0.2, %v4031_v51  ;;  %v4047_v56 = vsub.f32 1.0, %v4031_v51  ;;  %v4028_v57 = vadd.f32 %v4018_v45, %v3756_v54  ;;  %v3758_v58 = vpop.f32.mrb[3].mxu0  ;;  %v3981_v59 = vpop.f32.mrb[4].mxu1 }
 0x1e9   : > { %v4054_v61 = vmul.f32 %v4046_v53, %v4038_v52  ;;  %v4029_v62 = vadd.f32 %v4018_v45, %v3758_v58  ;;  %v3983_v63 = vpop.f32.mrb[5].mxu1  ;;  %v4026_v4 = vadd.f32 %v5296_v50, %v3981_v59 }
 0x1ea   : > { %v4055_v10 = vmul.f32 %v4047_v56, %v4039_v55  ;;  %v4036_v15 = vmul.f32 0.2, %v4028_v57  ;;  %v4044_v17 = vsub.f32 1.0, %v4028_v57  ;;  %v4027_v5 = vadd.f32 %v5296_v50, %v3983_v63 }
 0x1eb   : > { %v4062_v16 = vadd.f32 %v4054_v61, %v4022_v60  ;;  %v4037_v19 = vmul.f32 0.2, %v4029_v62  ;;  %v4045_v20 = vsub.f32 1.0, %v4029_v62  ;;  %v3904_v21 = vpop.f32.mrb[4].mxu0 }
 0x1ec   : > { %v4063_v26 = vadd.f32 %v4055_v10, %v4023_v9  ;;  %v4052_v28 = vmul.f32 %v4044_v17, %v4036_v15  ;;  %v3906_v3 = vpop.f32.mrb[5].mxu0  ;;  %v3987_v13 = vpop.f32.mrb[6].mxu1  ;;  %v4024_v47 = vadd.f32 %v5296_v50, %v3904_v21 }
 0x1ed   : > { %vm4070_vm10 = vcmp.gt.f32.partialorder %v4062_v16, 0.3  ;;  %v4053_v1 = vmul.f32 %v4045_v20, %v4037_v19  ;;  %v4034_v29 = vadd.f32 %v4018_v45, %v3987_v13  ;;  %v3989_v14 = vpop.f32.mrb[7].mxu1  ;;  %v4025_v48 = vadd.f32 %v5296_v50, %v3906_v3 }
 0x1ee   : > { %vm4071_vm11 = vcmp.gt.f32.partialorder %v4063_v26, 0.3  ;;  %v4372_v30 = vsel %vm4070_vm10, 1.0, %v4553_v0  ;;  %v4060_v31 = vadd.f32 %v4052_v28, %v4020_v22  ;;  %v4035_v32 = vadd.f32 %v4018_v45, %v3989_v14 }
 0x1ef   : > { %v4373_v2 = vsel %vm4071_vm11, 1.0, %v4553_v0  ;;  %v4061_v6 = vadd.f32 %v4053_v1, %v4021_v23  ;;  %v4042_v12 = vmul.f32 0.2, %v4034_v29  ;;  %v4050_v8 = vsub.f32 1.0, %v4034_v29  ;;  %v3910_v27 = vpop.f32.mrb[6].mxu0 }
 0x1f0   : > { %v4390_v34 = vpack.c.bf16 %v4373_v2, %v4372_v30  ;;  %vm4068_vm12 = vcmp.gt.f32.partialorder %v4060_v31, 0.3  ;;  %v4043_v24 = vmul.f32 0.2, %v4035_v32  ;;  %v4051_v36 = vsub.f32 1.0, %v4035_v32  ;;  %v3912_v37 = vpop.f32.mrb[7].mxu0 }
 0x1f1   : > { %v4370_v18 = vsel %vm4068_vm12, 1.0, %v4553_v0  ;;  %vm4069_vm13 = vcmp.gt.f32.partialorder %v4061_v6, 0.3  ;;  %v4058_v38 = vmul.f32 %v4050_v8, %v4042_v12  ;;  %v4032_v39 = vadd.f32 %v4018_v45, %v3910_v27 }
 0x1f2   : > { %v4371_v25 = vsel %vm4069_vm13, 1.0, %v4553_v0  ;;  %v4059_v41 = vmul.f32 %v4051_v36, %v4043_v24  ;;  %v4033_v42 = vadd.f32 %v4018_v45, %v3912_v37  ;;  %4380 = vst [vmem:[%s5311_s19 + $0x8] sm:$0xff] %v4390_v34 }
 0x1f3   : > { %v4389_v33 = vpack.c.bf16 %v4371_v25, %v4370_v18  ;;  %v4066_v43 = vadd.f32 %v4058_v38, %v4026_v4  ;;  %v4040_v35 = vmul.f32 0.2, %v4032_v39  ;;  %v4048_v11 = vsub.f32 1.0, %v4032_v39 }
 0x1f4   : > { %v4067_v40 = vadd.f32 %v4059_v41, %v4027_v5  ;;  %v4041_v44 = vmul.f32 0.2, %v4033_v42  ;;  %v4049_v46 = vsub.f32 1.0, %v4033_v42 }
 0x1f5   : > { %4106 = vst [vmem:[%s5311_s19] sm:$0xff] %v4389_v33  ;;  %vm4074_vm14 = vcmp.gt.f32.partialorder %v4066_v43, 0.3  ;;  %v4056_v7 = vmul.f32 %v4048_v11, %v4040_v35 }
 0x1f6   : > { %v4376_v49 = vsel %vm4074_vm14, 1.0, %v4553_v0  ;;  %vm4075_vm15 = vcmp.gt.f32.partialorder %v4067_v40, 0.3  ;;  %v4057_v45 = vmul.f32 %v4049_v46, %v4041_v44 }
 0x1f7   : > { %v4377_v51 = vsel %vm4075_vm15, 1.0, %v4553_v0  ;;  %v4064_v52 = vadd.f32 %v4056_v7, %v4024_v47 }
 0x1f8   : > { %v4392_v53 = vpack.c.bf16 %v4377_v51, %v4376_v49  ;;  %v4065_v54 = vadd.f32 %v4057_v45, %v4025_v48 }
 0x1f9   : > { %vm4072_vm0 = vcmp.gt.f32.partialorder %v4064_v52, 0.3 }
 0x1fa   : > { %v4374_v55 = vsel %vm4072_vm0, 1.0, %v4553_v0  ;;  %vm4073_vm1 = vcmp.gt.f32.partialorder %v4065_v54, 0.3  ;;  %4384 = vst [vmem:[%s5311_s19 + $0x18] sm:$0xff] %v4392_v53 }
 0x1fb   : > { %v4375_v56 = vsel %vm4073_vm1, 1.0, %v4553_v0 }
 0x1fc   : > { %v4391_v57 = vpack.c.bf16 %v4375_v56, %v4374_v55 }
 0x1fe   : > { %4382 = vst [vmem:[%s5311_s19 + $0x10] sm:$0xff] %v4391_v57 }
 0x1ff PF: > { %s14_s15 = sadd.s32 1, %s4551_s15  }
 0x200   : > { %p11_p4 = scmp.ge.s32.totalorder %s14_s15, 4  }
 0x202   :  { %13 = sbr.rel (!%p11_p4) target bundleno = 1 (0x1), region = 87 }

</bundles_post_ra>
